<compile_context>
chip_gen: v7x
topology: tpu7x:2x2x1
jax: 0.10.0
libtpu: 0.0.40
codegen_flags: <defaults>
</compile_context>

<pallas_src>
import functools

import jax
import jax.numpy as jnp
from jax import lax
from jax.experimental import pallas as pl
from jax.experimental.pallas import tpu as pltpu

LN_EPS = 1e-5  # PyTorch nn.LayerNorm default


# ---------------------------------------------------------------------------
# Fused kernel: assemble + whole layer stack on one resident per-batch tile,
# in a transposed (features-on-sublanes, sequence-on-lanes) layout.
#   plain layer:   h <- sin(Ws @ LN(h) + bs)         (sine_factor folded in)
#   ResLinear:     h <- h + alpha * sin(Ws @ LN(h) + bs)
# ---------------------------------------------------------------------------
def _fused_stack_kernel(x_ref, *refs, subset_size, layer_meta):
    # refs = (gamma0, beta0, Ws0, bs0, gamma1, ..., out_ref, asm_scratch)
    *param_refs, o_ref, asm_ref = refs

    halo = subset_size - 1
    feat = x_ref.shape[0]
    seq = asm_ref.shape[-1]

    # --- fused torch.roll + cat assembly -----------------------------------
    # Column j of x_ref holds data[:, (j - halo) % L, :]^T, so roll-by-i is a
    # static lane window [halo-i, halo-i+L).  Stack the S windows along the
    # feature (sublane) axis via slice-stores into a VMEM scratch.
    x_ext = x_ref[...]                                   # (F, L + halo) f32
    for i in range(subset_size):
        asm_ref[i * feat:(i + 1) * feat, :] = x_ext[:, halo - i: halo - i + seq]
    h = asm_ref[...]                                     # (S*F, L) f32

    # --- layer stack (stays resident; only the final tile hits HBM) --------
    for li, (residual, alpha) in enumerate(layer_meta):
        g_ref, beta_ref, w_ref, b_ref = param_refs[4 * li: 4 * li + 4]
        f_in = h.shape[0]
        inv_f = 1.0 / f_in
        # One-pass LN stats: one pair of sublane reductions per layer.
        s1 = jnp.sum(h, axis=0, keepdims=True)           # (1, L)
        s2 = jnp.sum(h * h, axis=0, keepdims=True)       # (1, L)
        mean = s1 * inv_f
        var = jnp.maximum(s2 * inv_f - mean * mean, 0.0)  # guard tiny negatives
        hn = (h - mean) * lax.rsqrt(var + LN_EPS) * g_ref[...] + beta_ref[...]
        # MXU: (f_out, f_in) @ (f_in, L) -> output lane-dense over the sequence.
        y = jnp.sin(jnp.dot(w_ref[...], hn,
                            preferred_element_type=jnp.float32) + b_ref[...])
        h = h + alpha * y if residual else y

    o_ref[...] = h.astype(o_ref.dtype)                   # (out_f, L)


def fused_subset_solver(data, layers, *, subset_size):
    """data: (B, L, F) float32.  Returns (B, L, features[-1]) float32."""
    B, L, F = data.shape
    halo = subset_size - 1

    # Trace-time skip of residual layers whose baked alpha is exactly 0
    # (rezero init): exact, since h + 0*y == h.  Retrace when alpha changes.
    active = [l for l in layers if not (l["residual"] and float(l["alpha"]) == 0.0)]
    out_f = active[-1]["ws"].shape[0] if active else subset_size * F
    layer_meta = tuple((l["residual"], float(l["alpha"])) for l in active)

    # Transposed, wrap-extended input (features on sublanes, seq on lanes).
    # This (and the output transpose below) is the only wrapper-side traffic,
    # ~ (1 + halo/L) x the raw input — vs. S x for the old assembled staging.
    dT = jnp.transpose(data, (0, 2, 1))                          # (B, F, L)
    cols = (jnp.arange(L + halo) - halo) % L
    x_ext = jnp.take(dT, cols, axis=2)                           # (B, F, L+halo)

    kernel = functools.partial(_fused_stack_kernel,
                               subset_size=subset_size, layer_meta=layer_meta)

    in_specs = [pl.BlockSpec((None, F, L + halo), lambda b: (b, 0, 0))]
    operands = [x_ext]
    for l in active:
        fo, fi = l["ws"].shape
        in_specs += [
            pl.BlockSpec((fi, 1), lambda b: (0, 0)),    # LN gamma  (f_in, 1)
            pl.BlockSpec((fi, 1), lambda b: (0, 0)),    # LN beta
            pl.BlockSpec((fo, fi), lambda b: (0, 0)),   # sine_factor-folded W
            pl.BlockSpec((fo, 1), lambda b: (0, 0)),    # sine_factor-folded bias
        ]
        operands += [l["gamma"].reshape(-1, 1), l["beta"].reshape(-1, 1),
                     l["ws"], l["bs"].reshape(-1, 1)]

    outT = pl.pallas_call(
        kernel,
        out_shape=jax.ShapeDtypeStruct((B, out_f, L), jnp.float32),
        grid=(B,),                        # >= 2 parallel steps -> both v7x TCs
        in_specs=in_specs,
        out_specs=pl.BlockSpec((None, out_f, L), lambda b: (b, 0, 0)),
        scratch_shapes=[pltpu.VMEM((subset_size * F, L), jnp.float32)],
        compiler_params=pltpu.CompilerParams(
            dimension_semantics=("parallel",),
            vmem_limit_bytes=32 * 1024 * 1024),
    )(*operands)

    # Cheap wrapper transpose back to the module's (B, L, out_f) layout.
    return jnp.transpose(outT, (0, 2, 1))


# ---------------------------------------------------------------------------
# Parameter construction (deterministic, PyTorch-default-like init).
# Stores both raw (for the reference) and sine_factor-folded (for the kernel).
# ---------------------------------------------------------------------------
def make_linear_params(key, in_f, out_f):
    kw, kb = jax.random.split(key)
    bound = 1.0 / jnp.sqrt(in_f)
    w = jax.random.uniform(kw, (out_f, in_f), jnp.float32, -bound, bound)
    b = jax.random.uniform(kb, (out_f,), jnp.float32, -bound, bound)
    return w, b


def build_subset_solver_params(key, in_features, subset_size, features,
                               *, sine_factor, rezero):
    in_f = in_features * subset_size
    layers = []
    for out_f in features:
        key, sub = jax.random.split(key)
        w, b = make_linear_params(sub, in_f, out_f)
        residual = (in_f == out_f)
        layers.append(dict(
            residual=residual,
            # rezero=True -> learnable re_alpha initialized at 0; else 1.
            alpha=(0.0 if rezero else 1.0) if residual else 1.0,
            gamma=jnp.ones((in_f,), jnp.float32),
            beta=jnp.zeros((in_f,), jnp.float32),
            w=w, b=b,                       # raw, used by the reference
            ws=sine_factor * w,             # factor folded, used by the kernel
            bs=sine_factor * b,
        ))
        in_f = out_f
    return layers


# ---------------------------------------------------------------------------
# Pure-JAX reference (raw weights, explicit sine_factor, two-pass LN)
# ---------------------------------------------------------------------------
def reference_forward(data, layers, *, subset_size, sine_factor):
    x = jnp.concatenate([jnp.roll(data, i, axis=1) for i in range(subset_size)],
                        axis=-1)
    for l in layers:
        mean = jnp.mean(x, axis=-1, keepdims=True)
        var = jnp.mean((x - mean) ** 2, axis=-1, keepdims=True)
        h = (x - mean) / jnp.sqrt(var + LN_EPS) * l["gamma"] + l["beta"]
        y = jnp.sin(sine_factor * (h @ l["w"].T + l["b"]))
        x = x + l["alpha"] * y if l["residual"] else y
    return x


if __name__ == "__main__":
    # Small config: in_features=4, subset_size=4 -> assembled width 16.
    # features=(32, 32): first layer is LN+Linear+Sine (16 != 32),
    #                    second is ResLinear (32 == 32).
    in_features, subset_size = 4, 4
    features = (32, 32)
    rezero = False
    sine_factor = 1.5
    batch, seq = 2, 8

    key = jax.random.PRNGKey(0)
    k_data, k_params = jax.random.split(key)
    data = jax.random.normal(k_data, (batch, seq, in_features), jnp.float32)

    layers = build_subset_solver_params(k_params, in_features, subset_size,
                                        features, sine_factor=sine_factor,
                                        rezero=rezero)

    out = fused_subset_solver(data, layers, subset_size=subset_size)
    out = jax.block_until_ready(out)

    ref = reference_forward(data, layers, subset_size=subset_size,
                            sine_factor=sine_factor)
    assert out.shape == (batch, seq, features[-1])
    assert jnp.allclose(out, ref, atol=1e-5, rtol=1e-5), "mismatch vs reference"
    print("KERNEL_OK")
</pallas_src>

<mosaic_0001>
module attributes {stable_mosaic.version = 11 : i64} {
  func.func @_fused_stack_kernel(%arg0: i32, %arg1: memref<1x4x11xf32, #tpu.memory_space<vmem>>, %arg2: memref<16x1xf32, #tpu.memory_space<vmem>>, %arg3: memref<16x1xf32, #tpu.memory_space<vmem>>, %arg4: memref<32x16xf32, #tpu.memory_space<vmem>>, %arg5: memref<32x1xf32, #tpu.memory_space<vmem>>, %arg6: memref<32x1xf32, #tpu.memory_space<vmem>>, %arg7: memref<32x1xf32, #tpu.memory_space<vmem>>, %arg8: memref<32x32xf32, #tpu.memory_space<vmem>>, %arg9: memref<32x1xf32, #tpu.memory_space<vmem>>, %arg10: memref<1x32x8xf32, #tpu.memory_space<vmem>>, %arg11: memref<16x8xf32, #tpu.memory_space<vmem>>) attributes {dimension_semantics = [#tpu.dimension_semantics<parallel>], iteration_bounds = array<i64: 2>, scalar_prefetch = 0 : i64, scratch_operands = 1 : i64, tpu.core_type = #tpu.core_type<tc>, window_params = [{transform_indices = @transform_0, window_bounds = array<i64: 1, 4, 11>}, {pipeline_mode = #tpu.pipeline_mode<synchronous>, transform_indices = @transform_1, window_bounds = array<i64: 16, 1>}, {pipeline_mode = #tpu.pipeline_mode<synchronous>, transform_indices = @transform_2, window_bounds = array<i64: 16, 1>}, {pipeline_mode = #tpu.pipeline_mode<synchronous>, transform_indices = @transform_3, window_bounds = array<i64: 32, 16>}, {pipeline_mode = #tpu.pipeline_mode<synchronous>, transform_indices = @transform_4, window_bounds = array<i64: 32, 1>}, {pipeline_mode = #tpu.pipeline_mode<synchronous>, transform_indices = @transform_5, window_bounds = array<i64: 32, 1>}, {pipeline_mode = #tpu.pipeline_mode<synchronous>, transform_indices = @transform_6, window_bounds = array<i64: 32, 1>}, {pipeline_mode = #tpu.pipeline_mode<synchronous>, transform_indices = @transform_7, window_bounds = array<i64: 32, 32>}, {pipeline_mode = #tpu.pipeline_mode<synchronous>, transform_indices = @transform_8, window_bounds = array<i64: 32, 1>}, {transform_indices = @transform_9, window_bounds = array<i64: 1, 32, 8>}]} {
    %c0 = arith.constant 0 : index
    %c0_0 = arith.constant 0 : index
    %c0_1 = arith.constant 0 : index
    %0 = vector.load %arg1[%c0, %c0_0, %c0_1] : memref<1x4x11xf32, #tpu.memory_space<vmem>>, vector<1x4x11xf32>
    %1 = vector.shape_cast %0 : vector<1x4x11xf32> to vector<4x11xf32>
    %2 = vector.extract_strided_slice %1 {offsets = [0, 3], sizes = [4, 8], strides = [1, 1]} : vector<4x11xf32> to vector<4x8xf32>
    %c0_2 = arith.constant 0 : index
    %c0_3 = arith.constant 0 : index
    %3 = vector.load %arg11[%c0_2, %c0_3] : memref<16x8xf32, #tpu.memory_space<vmem>>, vector<4x8xf32>
    tpu.vector_store %arg11[%c0_2, %c0_3], %2 {strides = array<i32>} : memref<16x8xf32, #tpu.memory_space<vmem>>, vector<4x8xf32>,
    %4 = vector.extract_strided_slice %1 {offsets = [0, 2], sizes = [4, 8], strides = [1, 1]} : vector<4x11xf32> to vector<4x8xf32>
    %c4 = arith.constant 4 : index
    %c0_4 = arith.constant 0 : index
    %5 = vector.load %arg11[%c4, %c0_4] : memref<16x8xf32, #tpu.memory_space<vmem>>, vector<4x8xf32>
    tpu.vector_store %arg11[%c4, %c0_4], %4 {strides = array<i32>} : memref<16x8xf32, #tpu.memory_space<vmem>>, vector<4x8xf32>,
    %6 = vector.extract_strided_slice %1 {offsets = [0, 1], sizes = [4, 8], strides = [1, 1]} : vector<4x11xf32> to vector<4x8xf32>
    %c8 = arith.constant 8 : index
    %c0_5 = arith.constant 0 : index
    %7 = vector.load %arg11[%c8, %c0_5] : memref<16x8xf32, #tpu.memory_space<vmem>>, vector<4x8xf32>
    tpu.vector_store %arg11[%c8, %c0_5], %6 {strides = array<i32>} : memref<16x8xf32, #tpu.memory_space<vmem>>, vector<4x8xf32>,
    %8 = vector.extract_strided_slice %1 {offsets = [0, 0], sizes = [4, 8], strides = [1, 1]} : vector<4x11xf32> to vector<4x8xf32>
    %c12 = arith.constant 12 : index
    %c0_6 = arith.constant 0 : index
    %9 = vector.load %arg11[%c12, %c0_6] : memref<16x8xf32, #tpu.memory_space<vmem>>, vector<4x8xf32>
    tpu.vector_store %arg11[%c12, %c0_6], %8 {strides = array<i32>} : memref<16x8xf32, #tpu.memory_space<vmem>>, vector<4x8xf32>,
    %c0_7 = arith.constant 0 : index
    %c0_8 = arith.constant 0 : index
    %10 = vector.load %arg11[%c0_7, %c0_8] : memref<16x8xf32, #tpu.memory_space<vmem>>, vector<16x8xf32>
    %cst = arith.constant dense<0.000000e+00> : vector<8xf32>
    %11 = vector.multi_reduction <add>, %10, %cst [0] : vector<16x8xf32> to vector<8xf32>
    %12 = vector.shape_cast %11 : vector<8xf32> to vector<1x8xf32>
    %13 = arith.mulf %10, %10 : vector<16x8xf32>
    %cst_9 = arith.constant dense<0.000000e+00> : vector<8xf32>
    %14 = vector.multi_reduction <add>, %13, %cst_9 [0] : vector<16x8xf32> to vector<8xf32>
    %15 = vector.shape_cast %14 : vector<8xf32> to vector<1x8xf32>
    %cst_10 = arith.constant 6.250000e-02 : f32
    %16 = vector.broadcast %cst_10 : f32 to vector<1x8xf32>
    %17 = arith.mulf %12, %16 : vector<1x8xf32>
    %cst_11 = arith.constant 6.250000e-02 : f32
    %18 = vector.broadcast %cst_11 : f32 to vector<1x8xf32>
    %19 = arith.mulf %15, %18 : vector<1x8xf32>
    %20 = arith.mulf %17, %17 : vector<1x8xf32>
    %21 = arith.subf %19, %20 : vector<1x8xf32>
    %cst_12 = arith.constant 0.000000e+00 : f32
    %22 = vector.broadcast %cst_12 : f32 to vector<1x8xf32>
    %23 = arith.maximumf %21, %22 : vector<1x8xf32>
    %24 = vector.broadcast %17 : vector<1x8xf32> to vector<16x8xf32>
    %25 = arith.subf %10, %24 : vector<16x8xf32>
    %cst_13 = arith.constant 9.99999974E-6 : f32
    %26 = vector.broadcast %cst_13 : f32 to vector<1x8xf32>
    %27 = arith.addf %23, %26 : vector<1x8xf32>
    %28 = math.rsqrt %27 : vector<1x8xf32>
    %29 = vector.broadcast %28 : vector<1x8xf32> to vector<16x8xf32>
    %30 = arith.mulf %25, %29 : vector<16x8xf32>
    %c0_14 = arith.constant 0 : index
    %c0_15 = arith.constant 0 : index
    %31 = vector.load %arg2[%c0_14, %c0_15] : memref<16x1xf32, #tpu.memory_space<vmem>>, vector<16x1xf32>
    %32 = vector.broadcast %31 : vector<16x1xf32> to vector<16x8xf32>
    %33 = arith.mulf %30, %32 : vector<16x8xf32>
    %c0_16 = arith.constant 0 : index
    %c0_17 = arith.constant 0 : index
    %34 = vector.load %arg3[%c0_16, %c0_17] : memref<16x1xf32, #tpu.memory_space<vmem>>, vector<16x1xf32>
    %35 = vector.broadcast %34 : vector<16x1xf32> to vector<16x8xf32>
    %36 = arith.addf %33, %35 : vector<16x8xf32>
    %c0_18 = arith.constant 0 : index
    %c0_19 = arith.constant 0 : index
    %37 = vector.load %arg4[%c0_18, %c0_19] : memref<32x16xf32, #tpu.memory_space<vmem>>, vector<32x16xf32>
    %cst_20 = arith.constant dense<0.000000e+00> : vector<32x8xf32>
    %38 = tpu.matmul %37, %36, %cst_20 {dimension_numbers = #tpu.dot_dimension_numbers<[1], [0], [0], [1], [0, 0, 1, 1], [], []>} : vector<32x16xf32>, vector<16x8xf32>, vector<32x8xf32> -> vector<32x8xf32>
    %c0_21 = arith.constant 0 : index
    %c0_22 = arith.constant 0 : index
    %39 = vector.load %arg5[%c0_21, %c0_22] : memref<32x1xf32, #tpu.memory_space<vmem>>, vector<32x1xf32>
    %40 = vector.broadcast %39 : vector<32x1xf32> to vector<32x8xf32>
    %41 = arith.addf %38, %40 : vector<32x8xf32>
    %42 = math.sin %41 : vector<32x8xf32>
    %cst_23 = arith.constant dense<0.000000e+00> : vector<8xf32>
    %43 = vector.multi_reduction <add>, %42, %cst_23 [0] : vector<32x8xf32> to vector<8xf32>
    %44 = vector.shape_cast %43 : vector<8xf32> to vector<1x8xf32>
    %45 = arith.mulf %42, %42 : vector<32x8xf32>
    %cst_24 = arith.constant dense<0.000000e+00> : vector<8xf32>
    %46 = vector.multi_reduction <add>, %45, %cst_24 [0] : vector<32x8xf32> to vector<8xf32>
    %47 = vector.shape_cast %46 : vector<8xf32> to vector<1x8xf32>
    %cst_25 = arith.constant 3.125000e-02 : f32
    %48 = vector.broadcast %cst_25 : f32 to vector<1x8xf32>
    %49 = arith.mulf %44, %48 : vector<1x8xf32>
    %cst_26 = arith.constant 3.125000e-02 : f32
    %50 = vector.broadcast %cst_26 : f32 to vector<1x8xf32>
    %51 = arith.mulf %47, %50 : vector<1x8xf32>
    %52 = arith.mulf %49, %49 : vector<1x8xf32>
    %53 = arith.subf %51, %52 : vector<1x8xf32>
    %cst_27 = arith.constant 0.000000e+00 : f32
    %54 = vector.broadcast %cst_27 : f32 to vector<1x8xf32>
    %55 = arith.maximumf %53, %54 : vector<1x8xf32>
    %56 = vector.broadcast %49 : vector<1x8xf32> to vector<32x8xf32>
    %57 = arith.subf %42, %56 : vector<32x8xf32>
    %cst_28 = arith.constant 9.99999974E-6 : f32
    %58 = vector.broadcast %cst_28 : f32 to vector<1x8xf32>
    %59 = arith.addf %55, %58 : vector<1x8xf32>
    %60 = math.rsqrt %59 : vector<1x8xf32>
    %61 = vector.broadcast %60 : vector<1x8xf32> to vector<32x8xf32>
    %62 = arith.mulf %57, %61 : vector<32x8xf32>
    %c0_29 = arith.constant 0 : index
    %c0_30 = arith.constant 0 : index
    %63 = vector.load %arg6[%c0_29, %c0_30] : memref<32x1xf32, #tpu.memory_space<vmem>>, vector<32x1xf32>
    %64 = vector.broadcast %63 : vector<32x1xf32> to vector<32x8xf32>
    %65 = arith.mulf %62, %64 : vector<32x8xf32>
    %c0_31 = arith.constant 0 : index
    %c0_32 = arith.constant 0 : index
    %66 = vector.load %arg7[%c0_31, %c0_32] : memref<32x1xf32, #tpu.memory_space<vmem>>, vector<32x1xf32>
    %67 = vector.broadcast %66 : vector<32x1xf32> to vector<32x8xf32>
    %68 = arith.addf %65, %67 : vector<32x8xf32>
    %c0_33 = arith.constant 0 : index
    %c0_34 = arith.constant 0 : index
    %69 = vector.load %arg8[%c0_33, %c0_34] : memref<32x32xf32, #tpu.memory_space<vmem>>, vector<32x32xf32>
    %cst_35 = arith.constant dense<0.000000e+00> : vector<32x8xf32>
    %70 = tpu.matmul %69, %68, %cst_35 {dimension_numbers = #tpu.dot_dimension_numbers<[1], [0], [0], [1], [0, 0, 1, 1], [], []>} : vector<32x32xf32>, vector<32x8xf32>, vector<32x8xf32> -> vector<32x8xf32>
    %c0_36 = arith.constant 0 : index
    %c0_37 = arith.constant 0 : index
    %71 = vector.load %arg9[%c0_36, %c0_37] : memref<32x1xf32, #tpu.memory_space<vmem>>, vector<32x1xf32>
    %72 = vector.broadcast %71 : vector<32x1xf32> to vector<32x8xf32>
    %73 = arith.addf %70, %72 : vector<32x8xf32>
    %74 = math.sin %73 : vector<32x8xf32>
    %cst_38 = arith.constant 1.000000e+00 : f32
    %75 = vector.broadcast %cst_38 : f32 to vector<32x8xf32>
    %76 = arith.mulf %75, %74 : vector<32x8xf32>
    %77 = arith.addf %42, %76 : vector<32x8xf32>
    %c0_39 = arith.constant 0 : index
    %c0_40 = arith.constant 0 : index
    %c0_41 = arith.constant 0 : index
    %78 = vector.load %arg10[%c0_39, %c0_40, %c0_41] : memref<1x32x8xf32, #tpu.memory_space<vmem>>, vector<1x32x8xf32>
    %79 = vector.shape_cast %78 : vector<1x32x8xf32> to vector<32x8xf32>
    %80 = vector.shape_cast %77 : vector<32x8xf32> to vector<1x32x8xf32>
    tpu.vector_store %arg10[%c0_39, %c0_40, %c0_41], %80 {strides = array<i32>} : memref<1x32x8xf32, #tpu.memory_space<vmem>>, vector<1x32x8xf32>,
    return
  }
  func.func @transform_0(%arg0: i32) -> (i32, i32, i32) {
    %c0_i32 = arith.constant 0 : i32
    %c0_i32_0 = arith.constant 0 : i32
    %c0_i32_1 = arith.constant 0 : i32
    return %arg0, %c0_i32, %c0_i32_0 : i32, i32, i32
  }
  func.func @transform_1(%arg0: i32) -> (i32, i32) {
    %c0_i32 = arith.constant 0 : i32
    %c0_i32_0 = arith.constant 0 : i32
    %c0_i32_1 = arith.constant 0 : i32
    return %c0_i32, %c0_i32_0 : i32, i32
  }
  func.func @transform_2(%arg0: i32) -> (i32, i32) {
    %c0_i32 = arith.constant 0 : i32
    %c0_i32_0 = arith.constant 0 : i32
    %c0_i32_1 = arith.constant 0 : i32
    return %c0_i32, %c0_i32_0 : i32, i32
  }
  func.func @transform_3(%arg0: i32) -> (i32, i32) {
    %c0_i32 = arith.constant 0 : i32
    %c0_i32_0 = arith.constant 0 : i32
    %c0_i32_1 = arith.constant 0 : i32
    return %c0_i32, %c0_i32_0 : i32, i32
  }
  func.func @transform_4(%arg0: i32) -> (i32, i32) {
    %c0_i32 = arith.constant 0 : i32
    %c0_i32_0 = arith.constant 0 : i32
    %c0_i32_1 = arith.constant 0 : i32
    return %c0_i32, %c0_i32_0 : i32, i32
  }
  func.func @transform_5(%arg0: i32) -> (i32, i32) {
    %c0_i32 = arith.constant 0 : i32
    %c0_i32_0 = arith.constant 0 : i32
    %c0_i32_1 = arith.constant 0 : i32
    return %c0_i32, %c0_i32_0 : i32, i32
  }
  func.func @transform_6(%arg0: i32) -> (i32, i32) {
    %c0_i32 = arith.constant 0 : i32
    %c0_i32_0 = arith.constant 0 : i32
    %c0_i32_1 = arith.constant 0 : i32
    return %c0_i32, %c0_i32_0 : i32, i32
  }
  func.func @transform_7(%arg0: i32) -> (i32, i32) {
    %c0_i32 = arith.constant 0 : i32
    %c0_i32_0 = arith.constant 0 : i32
    %c0_i32_1 = arith.constant 0 : i32
    return %c0_i32, %c0_i32_0 : i32, i32
  }
  func.func @transform_8(%arg0: i32) -> (i32, i32) {
    %c0_i32 = arith.constant 0 : i32
    %c0_i32_0 = arith.constant 0 : i32
    %c0_i32_1 = arith.constant 0 : i32
    return %c0_i32, %c0_i32_0 : i32, i32
  }
  func.func @transform_9(%arg0: i32) -> (i32, i32, i32) {
    %c0_i32 = arith.constant 0 : i32
    %c0_i32_0 = arith.constant 0 : i32
    %c0_i32_1 = arith.constant 0 : i32
    return %arg0, %c0_i32, %c0_i32_0 : i32, i32, i32
  }
}

</mosaic_0001>

<bundles_post_ra>
// kernel: tpu_custom_call.1
= control target key start
LH: loop header
LB: loop body
LE: loop exit
PB: predicated region body
PF: predicated region fallthrough
CT: control target
= control target key end

     0   :  { %s1913_s30 = smov 0   ;;  %s2607_s0 = inlined_call_operand.vmem [shape: f32[2,4,11], index: 0, kind: input, shape index: {}]   ;;  %s2608_s1 = inlined_call_operand.vmem [shape: f32[16,1], index: 1, kind: input, shape index: {}]   ;;  %s2609_s2 = inlined_call_operand.vmem [shape: f32[16,1], index: 2, kind: input, shape index: {}]   ;;  %s2610_s3 = inlined_call_operand.vmem [shape: f32[32,16], index: 3, kind: input, shape index: {}]   ;;  %s2611_s4 = inlined_call_operand.vmem [shape: f32[32,1], index: 4, kind: input, shape index: {}]   ;;  %s2612_s5 = inlined_call_operand.vmem [shape: f32[32,1], index: 5, kind: input, shape index: {}]   ;;  %s2613_s6 = inlined_call_operand.vmem [shape: f32[32,1], index: 6, kind: input, shape index: {}]   ;;  %s2614_s7 = inlined_call_operand.vmem [shape: f32[32,32], index: 7, kind: input, shape index: {}]   ;;  %s2615_s8 = inlined_call_operand.vmem [shape: f32[32,1], index: 8, kind: input, shape index: {}]   ;;  %s2616_s9 = inlined_call_operand.vmem [shape: f32[2,32,8], index: 9, kind: output, shape index: {}]  }
   0x1 LB: > { %s1656_s10 = sadd.s32 4294967295, %s1851_s30   ;;  %p1660_p0 = scmp.ge.s32.totalorder %s1851_s30, 1  ;;  %s1851_s30 = sphi %s1913_s30, %s19_s30  }
   0x2   : > { %p286_p1 = scmp.lt.s32.totalorder %s1851_s30, 3 }
   0x4   : > { %p287_p2 = pnand %p1660_p0, %p286_p1 }
   0x5   : > { %p321_p3 = scmp.lt.s32.totalorder (!%p287_p2), %s1656_s10, 1  ;;  %v1853_v0 = vmov (!%p287_p2), 0   ;;  %vm335_vm0 = vcmask (!%p287_p2), 60416   ;;  %s1854_s15 = smov (!%p287_p2), 127   ;;  %v380_v2 = vld [vmem:[%s2608_s1] sm:$0xff] (!%p287_p2)  ;;  %v381_v4 = vld [vmem:[%s2608_s1 + $0x8] sm:$0xff] (!%p287_p2) }
   0x6   : > { %290 = sbr.rel (%p287_p2) target bundleno = 945 (0x3b1), region = 56  ;;  %1807 = vset.pattern.permute.xlu1 (!%p287_p2), %v1853_v0  ;;  %1808 = vset.pattern.permute.xlu0 (!%p287_p2), %v1853_v0  ;;  %s1855_s16 = smov (!%p287_p2), 125   ;;  %v394_v3 = vld [vmem:[%s2609_s2] sm:$0xff] (!%p287_p2)  ;;  %v395_v5 = vld [vmem:[%s2609_s2 + $0x8] sm:$0xff] (!%p287_p2)  ;;  %v414_v8 = vld [vmem:[%s2611_s4 + $0x10] sm:$0xff] (!%p287_p2)  ;;  %vm436_vm1 = vcmask (!%p287_p2), 130048  }
   0x7   : > { %s1856_s19 = smov (!%p287_p2), 126   ;;  %v412_v6 = vld [vmem:[%s2611_s4] sm:$0xff] (!%p287_p2)  ;;  %v413_v7 = vld [vmem:[%s2611_s4 + $0x8] sm:$0xff] (!%p287_p2)  ;;  %v415_v9 = vld [vmem:[%s2611_s4 + $0x18] sm:$0xff] (!%p287_p2)  ;;  %vm348_vm2 = vcmask (!%p287_p2), 64512  }
   0x8   : > { %v995_v10 = vld [vmem:[%s2612_s5] sm:$0xff] (!%p287_p2)  ;;  %v996_v11 = vld [vmem:[%s2612_s5 + $0x8] sm:$0xff] (!%p287_p2)  ;;  %v997_v14 = vld [vmem:[%s2612_s5 + $0x10] sm:$0xff] (!%p287_p2) }
   0x9   : > { %v1023_v12 = vld [vmem:[%s2613_s6] sm:$0xff] (!%p287_p2)  ;;  %v1024_v13 = vld [vmem:[%s2613_s6 + $0x8] sm:$0xff] (!%p287_p2)  ;;  %v998_v15 = vld [vmem:[%s2612_s5 + $0x18] sm:$0xff] (!%p287_p2) }
   0xa   : > { %v1025_v16 = vld [vmem:[%s2613_s6 + $0x10] sm:$0xff] (!%p287_p2)  ;;  %v1026_v17 = vld [vmem:[%s2613_s6 + $0x18] sm:$0xff] (!%p287_p2)  ;;  %v1055_v18 = vld [vmem:[%s2615_s8] sm:$0xff] (!%p287_p2) }
   0xb   : > { %v1056_v19 = vld [vmem:[%s2615_s8 + $0x8] sm:$0xff] (!%p287_p2)  ;;  %v1057_v20 = vld [vmem:[%s2615_s8 + $0x10] sm:$0xff] (!%p287_p2)  ;;  %v1058_v21 = vld [vmem:[%s2615_s8 + $0x18] sm:$0xff] (!%p287_p2) }
   0xc   : > { %v408_v22 = vld [vmem:[%s2610_s3] sm:$0xff] (!%p287_p2) }
   0xd   : > { %s2628_s10 = smov (!%p321_p3, %s1656_s10), 1  ;;  %1725 = vmatprep.mubr.msk.f32.mxu0 %vm436_vm1, %v408_v22 }
   0xe   : > { %s1661_s11 = sshll.u32 %s2628_s10, 2  ;;  %s1706_s17 = sshll.u32 %s2628_s10, 5 }
   0xf   : > { %s324_s14 = scalar_lea.vmem %s2607_s0, %s1661_s11 }
  0x10   : > { %v330_v1 = vld [vmem:[%s324_s14] sm:$0xf] }
  0x11   : > { %341 = vrot.lane.b32.xlu1 %v330_v1, %s1854_s15  ;;  %332 = vrot.lane.b32.xlu0 %v330_v1, %s1855_s16  ;;  %345 = vst.msk [vmem:[#allocation2 + $0xc] sm:$0xf] %vm335_vm0, %v330_v1 }
  0x15   : > { %384 = vperm.xlu1 %1807, %v380_v2   ;;  %337 = vrot.lane.b32.xlu0 %v330_v1, %s1856_s19  ;;  %s2557_s19 = scalar_lea.vmem %s2616_s9, %s1706_s17 }
  0x19   : > { %398 = vperm.xlu1 %1807, %v394_v3   ;;  %389 = vperm.xlu0 %1808, %v381_v4   ;;  %v409_v4 = vld [vmem:[%s2610_s3 + $0x8] sm:$0xff] }
  0x1d   : > { %403 = vperm.xlu1 %1807, %v395_v5   ;;  %418 = vperm.xlu0 %1808, %v412_v6   ;;  %v410_v5 = vld [vmem:[%s2610_s3 + $0x10] sm:$0xff]  ;;  %v411_v6 = vld [vmem:[%s2610_s3 + $0x18] sm:$0xff] }
  0x21   : > { %423 = vperm.xlu1 %1807, %v413_v7   ;;  %428 = vperm.xlu0 %1808, %v414_v8  }
  0x25   : > { %433 = vperm.xlu1 %1807, %v415_v9   ;;  %1001 = vperm.xlu0 %1808, %v995_v10  }
  0x29   : > { %1006 = vperm.xlu1 %1807, %v996_v11   ;;  %1029 = vperm.xlu0 %1808, %v1023_v12  }
  0x2d   : > { %1034 = vperm.xlu1 %1807, %v1024_v13   ;;  %1011 = vperm.xlu0 %1808, %v997_v14  }
  0x31   : > { %1016 = vperm.xlu1 %1807, %v998_v15   ;;  %1039 = vperm.xlu0 %1808, %v1025_v16  }
  0x35   : > { %1044 = vperm.xlu1 %1807, %v1026_v17   ;;  %1061 = vperm.xlu0 %1808, %v1055_v18  }
  0x39   : > { %1066 = vperm.xlu1 %1807, %v1056_v19   ;;  %1071 = vperm.xlu0 %1808, %v1057_v20  }
  0x3d   : > { %1076 = vperm.xlu1 %1807, %v1058_v21  }
  0x83   : > { %v333_v23 = vpop.permute.xlu0 %332  ;;  %v342_v24 = vpop.permute.xlu1 %341 }
  0x84   : > { %336 = vst.msk [vmem:[#allocation2] sm:$0xf] %vm335_vm0, %v333_v23  ;;  %344 = vst.msk [vmem:[#allocation2 + $0x8] sm:$0xf] %vm335_vm0, %v342_v24 }
  0x87   : > { %v338_v25 = vpop.permute.xlu0 %337 }
  0x88   : > { %340 = vst.msk [vmem:[#allocation2 + $0x4] sm:$0xf] %vm335_vm0, %v338_v25 }
  0x8b   : > { %v347_v26 = vld [vmem:[#allocation2 + $0x8] sm:$0xff] }
  0x8c   : > { %v359_v27 = vmul.f32 %v347_v26, %v347_v26  ;;  %v350_v28 = vsel %vm348_vm2, %v347_v26, 0.0 }
  0x8e   : > { %v361_v32 = vsel %vm348_vm2, %v359_v27, 0.0 }
  0x8f   : > { %v346_v29 = vld [vmem:[#allocation2] sm:$0xff] }
  0x90   : > { %v349_v30 = vsel %vm348_vm2, %v346_v29, 0.0  ;;  %v358_v31 = vmul.f32 %v346_v29, %v346_v29 }
  0x91   : > { %v351_v33 = vadd.f32 %v350_v28, %v349_v30 }
  0x92   : > { %v360_v34 = vsel %vm348_vm2, %v358_v31, 0.0 }
  0x93   : > { %v352_v35 = vrot.slane %v351_v33, 4  ;;  %v362_v36 = vadd.f32 %v361_v32, %v360_v34 }
  0x94   : > { %v385_v54 = vpop.permute.xlu1 %384 }
  0x95   : > { %v353_v37 = vadd.f32 %v352_v35, %v351_v33  ;;  %v363_v38 = vrot.slane %v362_v36, 4 }
  0x97   : > { %v354_v39 = vrot.slane %v353_v37, 2  ;;  %v364_v40 = vadd.f32 %v363_v38, %v362_v36 }
  0x98   : > { %v399_v55 = vpop.permute.xlu1 %398  ;;  %v390_v61 = vpop.permute.xlu0 %389 }
  0x99   : > { %v355_v41 = vadd.f32 %v354_v39, %v353_v37  ;;  %v365_v42 = vrot.slane %v364_v40, 2 }
  0x9b   : > { %v356_v43 = vrot.slane %v355_v41, 1  ;;  %v366_v44 = vadd.f32 %v365_v42, %v364_v40 }
  0x9c   : > { %v404_v0 = vpop.permute.xlu1 %403  ;;  %v419_v9 = vpop.permute.xlu0 %418 }
  0x9d   : > { %v357_v45 = vadd.f32 %v356_v43, %v355_v41  ;;  %v367_v46 = vrot.slane %v366_v44, 1  ;;  %v1857_v43 = vmov 683565275  }
  0x9f   : > { %v368_v47 = vadd.f32 %v367_v46, %v366_v44  ;;  %v369_v48 = vmul.f32 0.0625, %v357_v45 }
  0xa0   : > { %v424_v7 = vpop.permute.xlu1 %423 }
  0xa1   : > { %v370_v49 = vmul.f32 0.0625, %v368_v47  ;;  %v371_v50 = vmul.f32 %v369_v48, %v369_v48  ;;  %v374_v56 = vsub.f32 %v346_v29, %v369_v48  ;;  %v375_v57 = vsub.f32 %v347_v26, %v369_v48 }
  0xa2   : > { %v1858_v47 = vmov 2475754826  }
  0xa3   : > { %v372_v51 = vsub.f32 %v370_v49, %v371_v50  ;;  %v1859_v49 = vmov 2131351028  }
  0xa4   : > { %v434_v15 = vpop.permute.xlu1 %433 }
  0xa5   : > { %v373_v52 = vmax.f32 %v372_v51, 0.0  ;;  %v1860_v51 = vmov 2102212464  }
  0xa7   : > { %v376_v53 = vadd.f32 1e-05, %v373_v52 }
  0xa9   : > { %1809 = vrsqrt.f32 %v376_v53  ;;  %v1861_v53 = vmov 920167782  }
  0xb3   : > { %v1810_v58 = vpop.eup %1809 }
  0xb4   : > { %v378_v59 = vmul.f32 %v1810_v58, %v374_v56  ;;  %v379_v60 = vmul.f32 %v1810_v58, %v375_v57 }
  0xb6   : > { %v392_v62 = vmul.f32 %v385_v54, %v378_v59  ;;  %v393_v63 = vmul.f32 %v390_v61, %v379_v60  ;;  %v1862_v60 = vmov 1326507024  }
  0xb8   : > { %v406_v1 = vadd.f32 %v399_v55, %v392_v62  ;;  %v407_v2 = vadd.f32 %v404_v0, %v393_v63 }
  0xba   : > { %v1745_v3 = vpack.c.bf16 %v407_v2, %v406_v1 }
  0xbc   : > { %1746 = vmatprep.subr.bf16.mxu0 %v1745_v3 }
  0xbd   : > { %1748 = vmatpush3.bf16.msra.mxu0 %v1745_v3 }
  0xc0   : > { %1726 = vmatmul.mubr.msk.f32.vlgmr.msra.gmra.mrb[0].mxu0 %vm436_vm1, %v409_v4 }
  0xc1   : > { %1728 = vmatprep.mubr.msk.f32.mxu0 %vm436_vm1, %v410_v5 }
  0xc4   : > { %1729 = vmatmul.mubr.msk.f32.gmra.mrb[2].mxu0 %vm436_vm1, %v411_v6 }
 0x193   : > { %v1727_v8 = vpop.f32.mrb[0].mxu0 }
 0x194   : > { %v2011_v10 = vadd.f32 %v1727_v8, %v424_v7  ;;  %v515_v11 = vpop.f32.mrb[1].mxu0 }
 0x195   : > { %v2013_v12 = vadd.f32 %v515_v11, %v419_v9 }
 0x196   : > { %v638_v13 = vand.u32 2147483647, %v2011_v10  ;;  %v641_v14 = vand.u32 2139095040, %v2011_v10 }
 0x197   : > { %v534_v16 = vand.u32 2147483647, %v2013_v12  ;;  %v537_v17 = vand.u32 2139095040, %v2013_v12  ;;  %v1730_v18 = vpop.f32.mrb[2].mxu0 }
 0x198   : > { %v642_v19 = vshrl.u32 %v641_v14, 23  ;;  %v2019_v20 = vadd.f32 %v1730_v18, %v434_v15  ;;  %v2021_v21 = vpop.f32.mrb[3].mxu0  ;;  %v645_v22 = vand.u32 8388607, %v638_v13 }
 0x199   : > { %v538_v23 = vshrl.u32 %v537_v17, 23  ;;  %v541_v24 = vand.u32 8388607, %v534_v16 }
 0x19a   : > { %v1672_v25 = vadd.s32 4294967169, %v642_v19  ;;  %v849_v27 = vand.u32 2139095040, %v2019_v20  ;;  %v646_v29 = vor.u32 8388608, %v645_v22  ;;  %v846_v41 = vand.u32 2147483647, %v2019_v20 }
 0x19b   : > { %v1668_v26 = vadd.s32 4294967169, %v538_v23  ;;  %v542_v30 = vor.u32 8388608, %v541_v24 }
 0x19c   : > { %v648_v28 = vadd.s32 1, %v1672_v25  ;;  %v850_v32 = vshrl.u32 %v849_v27, 23  ;;  %v2028_v38 = vshll.u32 %v646_v29, 8 }
 0x19d   : > { %v544_v31 = vadd.s32 1, %v1668_v26  ;;  %v2032_v40 = vshll.u32 %v542_v30, 8 }
 0x19e   : > { %vm649_vm3 = vcmp.gt.s32.totalorder %v648_v28, 0  ;;  %v1680_v34 = vadd.s32 4294967169, %v850_v32 }
 0x19f   : > { %v650_v33 = vsel %vm649_vm3, %v648_v28, 0  ;;  %vm545_vm4 = vcmp.gt.s32.totalorder %v544_v31, 0 }
 0x1a0   : > { %v651_v35 = vshrl.u32 %v650_v33, 5  ;;  %v652_v36 = vand.u32 31, %v650_v33  ;;  %v546_v37 = vsel %vm545_vm4, %v544_v31, 0  ;;  %v2036_v46 = vadd.s32 1, %v1680_v34 }
 0x1a1   : > { %v2030_v39 = vshrl.u32 %v546_v37, 5  ;;  %v548_v45 = vand.u32 31, %v546_v37 }
 0x1a2   : > { %v653_v42 = vsub.s32 32, %v652_v36  ;;  %v655_v44 = vshll.u32 %v1857_v43, %v652_v36  ;;  %v658_v48 = vshll.u32 %v1858_v47, %v652_v36  ;;  %v661_v50 = vshll.u32 %v1859_v49, %v652_v36 }
 0x1a3   : > { %v664_v52 = vshll.u32 %v1860_v51, %v652_v36  ;;  %v667_v54 = vshll.u32 %v1861_v53, %v652_v36  ;;  %vm670_vm5 = vcmp.lt.s32.totalorder %v651_v35, 1  ;;  %vm671_vm6 = vcmp.lt.s32.totalorder %v651_v35, 2 }
 0x1a4   : > { %v656_v55 = vshrl.u32 %v1858_v47, %v653_v42  ;;  %v659_v56 = vshrl.u32 %v1859_v49, %v653_v42  ;;  %v662_v57 = vshrl.u32 %v1860_v51, %v653_v42  ;;  %v654_v58 = vshrl.u32 %v1857_v43, %v653_v42 }
 0x1a5   : > { %v665_v59 = vshrl.u32 %v1861_v53, %v653_v42  ;;  %v668_v61 = vshrl.u32 %v1862_v60, %v653_v42  ;;  %v549_v1 = vsub.s32 32, %v548_v45  ;;  %vm672_vm7 = vcmp.lt.s32.totalorder %v651_v35, 3 }
 0x1a6   : > { %v657_v62 = vor.u32 %v656_v55, %v655_v44  ;;  %v660_v63 = vor.u32 %v659_v56, %v658_v48  ;;  %v663_v0 = vor.u32 %v662_v57, %v661_v50  ;;  %vm673_vm8 = vcmp.lt.s32.totalorder %v651_v35, 4 }
 0x1a7   : > { %v666_v2 = vor.u32 %v665_v59, %v664_v52  ;;  %v669_v3 = vor.u32 %v668_v61, %v667_v54  ;;  %v551_v14 = vshll.u32 %v1857_v43, %v548_v45  ;;  %v552_v18 = vshrl.u32 %v1858_v47, %v549_v1 }
 0x1a8   : > { %v674_v4 = vsel %vm670_vm5, %v654_v58, %v657_v62  ;;  %v675_v5 = vsel %vm673_vm8, %v663_v0, 2102212464  ;;  %v678_v6 = vsel %vm670_vm5, %v657_v62, %v660_v63  ;;  %v682_v7 = vsel %vm670_vm5, %v660_v63, %v663_v0 }
 0x1a9   : > { %v676_v8 = vsel %vm672_vm7, %v660_v63, %v675_v5  ;;  %v679_v9 = vsel %vm673_vm8, %v666_v2, 920167782  ;;  %v683_v11 = vsel %vm673_vm8, %v669_v3, 1326507024  ;;  %v554_v19 = vshll.u32 %v1858_v47, %v548_v45 }
 0x1aa   : > { %v680_v15 = vsel %vm672_vm7, %v663_v0, %v679_v9  ;;  %v684_v17 = vsel %vm672_vm7, %v666_v2, %v683_v11  ;;  %v677_v22 = vsel %vm671_vm6, %v674_v4, %v676_v8  ;;  %v555_v25 = vshrl.u32 %v1859_v49, %v549_v1  ;;  %v429_v9 = vpop.permute.xlu0 %428 }
 0x1ab   : > { %v681_v23 = vsel %vm671_vm6, %v678_v6, %v680_v15  ;;  %v685_v24 = vsel %vm671_vm6, %v682_v7, %v684_v17  ;;  %v553_v30 = vor.u32 %v552_v18, %v551_v14  ;;  %v557_v32 = vshll.u32 %v1859_v49, %v548_v45 }
 0x1ac   : > { %v2059_v26 = vmul.u32.u64.low %v2028_v38, %v685_v24  ;;  %v2060_v27 = vmul.u32.u64.high %v2028_v38, %v685_v24, %v2059_v26  ;;  %v2063_v28 = vmul.u32.u64.low %v2028_v38, %v681_v23  ;;  %v2064_v29 = vmul.u32.u64.high %v2028_v38, %v681_v23, %v2063_v28 }
 0x1ad   : > { %v556_v31 = vor.u32 %v555_v25, %v554_v19  ;;  %v558_v33 = vshrl.u32 %v1860_v51, %v549_v1  ;;  %v550_v34 = vshrl.u32 %v1857_v43, %v549_v1  ;;  %v560_v35 = vshll.u32 %v1860_v51, %v548_v45 }
 0x1ae   : > { %v561_v36 = vshrl.u32 %v1861_v53, %v549_v1  ;;  %v564_v37 = vshrl.u32 %v1862_v60, %v549_v1  ;;  %v693_v42 = vmul.u32 %v2028_v38, %v677_v22  ;;  %v563_v48 = vshll.u32 %v1861_v53, %v548_v45 }
 0x1af   : > { %v559_v44 = vor.u32 %v558_v33, %v557_v32  ;;  %vm566_vm9 = vcmp.lt.s32.totalorder %v2030_v39, 1  ;;  %vm695_vm10 = vc.u32 %v2060_v27, %v2063_v28  ;;  %v696_v50 = vadd.s32 1, %v2064_v29 }
 0x1b0   : > { %v562_v52 = vor.u32 %v561_v36, %v560_v35  ;;  %vm567_vm11 = vcmp.lt.s32.totalorder %v2030_v39, 2  ;;  %v565_v54 = vor.u32 %v564_v37, %v563_v48  ;;  %vm568_vm12 = vcmp.lt.s32.totalorder %v2030_v39, 3 }
 0x1b1   : > { %vm569_vm13 = vcmp.lt.s32.totalorder %v2030_v39, 4  ;;  %v574_v55 = vsel %vm566_vm9, %v553_v30, %v556_v31  ;;  %v697_v38 = vsel %vm695_vm10, %v696_v50, %v2064_v29  ;;  %v578_v57 = vsel %vm566_vm9, %v556_v31, %v559_v44 }
 0x1b2   : > { %v571_v56 = vsel %vm569_vm13, %v559_v44, 2102212464  ;;  %v575_v45 = vsel %vm569_vm13, %v562_v52, 920167782  ;;  %v698_v58 = vadd.s32 %v697_v38, %v693_v42  ;;  %v570_v59 = vsel %vm566_vm9, %v550_v34, %v553_v30 }
 0x1b3   : > { %v576_v61 = vsel %vm568_vm12, %v559_v44, %v575_v45  ;;  %v579_v62 = vsel %vm569_vm13, %v565_v54, 1326507024  ;;  %v572_v63 = vsel %vm568_vm12, %v556_v31, %v571_v56  ;;  %vm857_vm14 = vcmp.gt.s32.totalorder %v2036_v46, 0 }
 0x1b4   : > { %v577_v0 = vsel %vm567_vm11, %v574_v55, %v576_v61  ;;  %v580_v1 = vsel %vm568_vm12, %v562_v52, %v579_v62  ;;  %v699_v2 = vadd.s32 536870912, %v698_v58  ;;  %v858_v8 = vsel %vm857_vm14, %v2036_v46, 0 }
 0x1b5   : > { %v581_v3 = vsel %vm567_vm11, %v578_v57, %v580_v1  ;;  %v2089_v4 = vmul.u32.u64.low %v2032_v40, %v577_v0  ;;  %v2090_v5 = vmul.u32.u64.high %v2032_v40, %v577_v0, %v2089_v4  ;;  %v573_v14 = vsel %vm567_vm11, %v570_v59, %v572_v63 }
 0x1b6   : > { %v2094_v6 = vmul.u32.u64.low %v2032_v40, %v581_v3  ;;  %v2095_v7 = vmul.u32.u64.high %v2032_v40, %v581_v3, %v2094_v6  ;;  %v2098_v11 = vshrl.u32 %v699_v2, 30  ;;  %v860_v15 = vand.u32 31, %v858_v8 }
 0x1b7   : > { %v2103_v17 = vadd.f32 %v2021_v21, %v429_v9  ;;  %v592_v19 = vadd.s32 1, %v2090_v5  ;;  %v853_v22 = vand.u32 8388607, %v846_v41  ;;  %v589_v46 = vmul.u32 %v2032_v40, %v573_v14 }
 0x1b8   : > { %v701_v18 = vshll.u32 %v2098_v11, 30  ;;  %v861_v23 = vsub.s32 32, %v860_v15  ;;  %vm591_vm15 = vc.u32 %v2095_v7, %v2089_v4  ;;  %v859_v34 = vshrl.u32 %v858_v8, 5 }
 0x1b9   : > { %v593_v39 = vsel %vm591_vm15, %v592_v19, %v2090_v5  ;;  %v854_v30 = vor.u32 8388608, %v853_v22  ;;  %v745_v32 = vand.u32 2139095040, %v2103_v17  ;;  %v863_v40 = vshll.u32 %v1857_v43, %v860_v15 }
 0x1ba   : > { %v702_v24 = vsub.s32 %v698_v58, %v701_v18  ;;  %v594_v25 = vadd.s32 %v593_v39, %v589_v46  ;;  %v864_v21 = vshrl.u32 %v1858_v47, %v861_v23  ;;  %v867_v26 = vshrl.u32 %v1859_v49, %v861_v23 }
 0x1bb   : > { %v870_v31 = vshrl.u32 %v1860_v51, %v861_v23  ;;  %v866_v35 = vshll.u32 %v1858_v47, %v860_v15  ;;  %v869_v37 = vshll.u32 %v1859_v49, %v860_v15  ;;  %v872_v42 = vshll.u32 %v1860_v51, %v860_v15 }
 0x1bc   : > { %v704_v29 = vsub.s32 0, %v702_v24  ;;  %v595_v33 = vadd.s32 536870912, %v594_v25  ;;  %v873_v44 = vshrl.u32 %v1861_v53, %v861_v23  ;;  %v865_v50 = vor.u32 %v864_v21, %v863_v40 }
 0x1bd   : > { %v868_v52 = vor.u32 %v867_v26, %v866_v35  ;;  %v876_v54 = vshrl.u32 %v1862_v60, %v861_v23  ;;  %v871_v38 = vor.u32 %v870_v31, %v869_v37  ;;  %v746_v45 = vshrl.u32 %v745_v32, 23 }
 0x1be   : > { %v1673_v36 = vmin.u32 %v704_v29, %v702_v24  ;;  %v2122_v48 = vshrl.u32 %v595_v33, 30  ;;  %v874_v56 = vor.u32 %v873_v44, %v872_v42  ;;  %v694_v57 = vadd.s32 %v2063_v28, %v2060_v27 }
 0x1bf   : > { %v875_v59 = vshll.u32 %v1861_v53, %v860_v15  ;;  %v894_v61 = vshll.u32 %v854_v30, 8  ;;  %vm878_vm0 = vcmp.lt.s32.totalorder %v859_v34, 1  ;;  %vm880_vm1 = vcmp.lt.s32.totalorder %v859_v34, 3 }
 0x1c0   : > { %v706_v55 = vclz %v1673_v36  ;;  %v597_v58 = vshll.u32 %v2122_v48, 30  ;;  %vm881_vm3 = vcmp.lt.s32.totalorder %v859_v34, 4  ;;  %v886_v1 = vsel %vm878_vm0, %v865_v50, %v868_v52 }
 0x1c1   : > { %v877_v0 = vor.u32 %v876_v54, %v875_v59  ;;  %v887_v2 = vsel %vm881_vm3, %v874_v56, 920167782  ;;  %v883_v3 = vsel %vm881_vm3, %v871_v38, 2102212464  ;;  %v1676_v28 = vadd.s32 4294967169, %v746_v45 }
 0x1c2   : > { %v1674_v62 = vadd.s32 4294967294, %v706_v55  ;;  %v2129_v63 = vsub.s32 %v594_v25, %v597_v58  ;;  %v888_v27 = vsel %vm880_vm1, %v871_v38, %v887_v2  ;;  %v862_v8 = vshrl.u32 %v1857_v43, %v861_v23 }
 0x1c3   : > { %vm879_vm5 = vcmp.lt.s32.totalorder %v859_v34, 2  ;;  %v890_v18 = vsel %vm878_vm0, %v868_v52, %v871_v38  ;;  %v884_v46 = vsel %vm880_vm1, %v868_v52, %v883_v3  ;;  %v891_v39 = vsel %vm881_vm3, %v877_v0, 1326507024 }
 0x1c4   : > { %vm1675_vm4 = vcmp.lt.s32.totalorder %v1674_v62, 0  ;;  %v600_v6 = vsub.s32 0, %v2129_v63  ;;  %v889_v15 = vsel %vm879_vm5, %v886_v1, %v888_v27  ;;  %v882_v22 = vsel %vm878_vm0, %v862_v8, %v865_v50 }
 0x1c5   : > { %v709_v5 = vsel %vm1675_vm4, 0, %v1674_v62  ;;  %v892_v23 = vsel %vm880_vm1, %v874_v56, %v891_v39  ;;  %v2145_v30 = vmul.u32.u64.low %v894_v61, %v889_v15  ;;  %v2146_v31 = vmul.u32.u64.high %v894_v61, %v889_v15, %v2145_v30 }
 0x1c6   : > { %v710_v9 = vsub.s32 32, %v709_v5  ;;  %v714_v14 = vsub.s32 4294967266, %v709_v5  ;;  %v1669_v19 = vmin.u32 %v600_v6, %v2129_v63  ;;  %v711_v25 = vshll.u32 %v702_v24, %v709_v5 }
 0x1c7   : > { %v893_v29 = vsel %vm879_vm5, %v890_v18, %v892_v23  ;;  %v885_v37 = vsel %vm879_vm5, %v882_v22, %v884_v46  ;;  %v752_v42 = vadd.s32 1, %v1676_v28  ;;  %v724_v44 = vsub.s32 4, %v2098_v11 }
 0x1c8   : > { %v712_v21 = vshrl.u32 %v694_v57, %v710_v9  ;;  %v715_v26 = vadd.s32 127, %v714_v14  ;;  %v2149_v40 = vmul.u32.u64.low %v894_v61, %v893_v29  ;;  %v2150_v35 = vmul.u32.u64.high %v894_v61, %v893_v29, %v2149_v40 }
 0x1c9   : > { %v602_v36 = vclz %v1669_v19  ;;  %v904_v50 = vadd.s32 1, %v2146_v31  ;;  %vm753_vm6 = vcmp.gt.s32.totalorder %v752_v42, 0  ;;  %v901_v55 = vmul.u32 %v894_v61, %v885_v37 }
 0x1ca   : > { %v713_v32 = vor.u32 %v712_v21, %v711_v25  ;;  %v716_v33 = vshll.u32 %v715_v26, 23  ;;  %vm903_vm7 = vc.u32 %v2150_v35, %v2145_v30  ;;  %vm640_vm8 = vcmp.lt.s32.totalorder %v2011_v10, 0 }
 0x1cb   : > { %v1670_v38 = vadd.s32 4294967294, %v602_v36  ;;  %v905_v56 = vsel %vm903_vm7, %v904_v50, %v2146_v31  ;;  %v742_v57 = vand.u32 2147483647, %v2103_v17  ;;  %v754_v58 = vsel %vm753_vm6, %v752_v42, 0 }
 0x1cc   : > { %v717_v24 = vor.u32 4788187, %v716_v33  ;;  %v720_v54 = vcvt.s32.f32 %v713_v32  ;;  %v906_v45 = vadd.s32 %v905_v56, %v901_v55  ;;  %v725_v59 = vsel %vm640_vm8, %v724_v44, %v2098_v11 }
 0x1cd   : > { %v756_v62 = vand.u32 31, %v754_v58  ;;  %vm639_vm9 = vcmp.le.f32.partialorder %v638_v13, 0.7853982  ;;  %vm1671_vm10 = vcmp.lt.s32.totalorder %v1670_v38, 0  ;;  %v749_v28 = vand.u32 8388607, %v742_v57 }
 0x1ce   : > { %v718_v52 = vand.u32 2147483647, %v717_v24  ;;  %v907_v1 = vadd.s32 536870912, %v906_v45  ;;  %v727_v3 = vsel %vm639_vm9, 0, %v725_v59  ;;  %v2168_v6 = vsel %vm1671_vm10, 0, %v1670_v38 }
 0x1cf   : > { %v757_v61 = vsub.s32 32, %v756_v62  ;;  %v731_v9 = vadd.s32 3, %v727_v3  ;;  %v750_v18 = vor.u32 8388608, %v749_v28  ;;  %v759_v19 = vshll.u32 %v1857_v43, %v756_v62 }
 0x1d0   : > { %v721_v34 = vmul.f32 %v720_v54, %v718_v52  ;;  %v2163_v27 = vshrl.u32 %v907_v1, 30  ;;  %v610_v22 = vsub.s32 4294967266, %v2168_v6  ;;  %v755_v46 = vshrl.u32 %v754_v58, 5 }
 0x1d1   : > { %v760_v8 = vshrl.u32 %v1858_v47, %v757_v61  ;;  %v763_v13 = vshrl.u32 %v1859_v49, %v757_v61  ;;  %v766_v14 = vshrl.u32 %v1860_v51, %v757_v61  ;;  %v762_v39 = vshll.u32 %v1858_v47, %v756_v62 }
 0x1d2   : > { %v722_v0 = vxor.u32 2147483648, %v721_v34  ;;  %v909_v11 = vshll.u32 %v2163_v27, 30  ;;  %v765_v25 = vshll.u32 %v1859_v49, %v756_v62  ;;  %v768_v23 = vshll.u32 %v1860_v51, %v756_v62 }
 0x1d3   : > { %v761_v26 = vor.u32 %v760_v8, %v759_v19  ;;  %v769_v29 = vshrl.u32 %v1861_v53, %v757_v61  ;;  %v764_v31 = vor.u32 %v763_v13, %v762_v39  ;;  %v771_v33 = vshll.u32 %v1861_v53, %v756_v62 }
 0x1d4   : > { %v723_v2 = vsel %vm640_vm8, %v722_v0, %v721_v34  ;;  %v2174_v15 = vsub.s32 %v906_v45, %v909_v11  ;;  %v767_v32 = vor.u32 %v766_v14, %v765_v25  ;;  %v772_v40 = vshrl.u32 %v1862_v60, %v757_v61 }
 0x1d5   : > { %v726_v5 = vsel %vm639_vm9, %v2011_v10, %v723_v2  ;;  %v770_v37 = vor.u32 %v769_v29, %v768_v23  ;;  %v732_v42 = vand.u32 3, %v731_v9  ;;  %v590_v24 = vadd.s32 %v2089_v4, %v2095_v7  ;;  %v1051_v9 = vld [vmem:[%s2614_s7] sm:$0xff] }
 0x1d6   : > { %1811 = vsinq.f32 %v726_v5  ;;  %v912_v21 = vsub.s32 0, %v2174_v15  ;;  %v773_v44 = vor.u32 %v772_v40, %v771_v33  ;;  %v790_v50 = vshll.u32 %v750_v18, 8 }
 0x1d7   : > { %1813 = vcosq.f32 %v726_v5  ;;  %v606_v52 = vsub.s32 32, %v2168_v6  ;;  %vm774_vm11 = vcmp.lt.s32.totalorder %v755_v46, 1  ;;  %vm777_vm12 = vcmp.lt.s32.totalorder %v755_v46, 4 }
 0x1d8   : > { %v1681_v36 = vmin.u32 %v912_v21, %v2174_v15  ;;  %v611_v55 = vadd.s32 127, %v610_v22  ;;  %v758_v38 = vshrl.u32 %v1857_v43, %v757_v61  ;;  %v779_v56 = vsel %vm777_vm12, %v767_v32, 2102212464 }
 0x1d9   : > { %v782_v34 = vsel %vm774_vm11, %v761_v26, %v764_v31  ;;  %vm775_vm13 = vcmp.lt.s32.totalorder %v755_v46, 2  ;;  %vm776_vm14 = vcmp.lt.s32.totalorder %v755_v46, 3  ;;  %v783_v58 = vsel %vm777_vm12, %v770_v37, 920167782 }
 0x1da   : > { %v914_v54 = vclz %v1681_v36  ;;  %v778_v62 = vsel %vm774_vm11, %v758_v38, %v761_v26  ;;  %v784_v0 = vsel %vm776_vm14, %v767_v32, %v783_v58  ;;  %v786_v4 = vsel %vm774_vm11, %v764_v31, %v767_v32 }
 0x1db   : > { %v787_v7 = vsel %vm777_vm12, %v773_v44, 1326507024  ;;  %v780_v2 = vsel %vm776_vm14, %v764_v31, %v779_v56  ;;  %v785_v3 = vsel %vm775_vm13, %v782_v34, %v784_v0  ;;  %v612_v13 = vshll.u32 %v611_v55, 23 }
 0x1dc   : > { %v1682_v45 = vadd.s32 4294967294, %v914_v54  ;;  %v788_v28 = vsel %vm776_vm14, %v770_v37, %v787_v7  ;;  %v2192_v11 = vmul.u32.u64.low %v790_v50, %v785_v3  ;;  %v2193_v8 = vmul.u32.u64.high %v790_v50, %v785_v3, %v2192_v11 }
 0x1dd   : > { %v789_v61 = vsel %vm775_vm13, %v786_v4, %v788_v28  ;;  %vm734_vm0 = vcmp.eq.s32.totalorder %v732_v42, 0  ;;  %vm1079_vm1 = vcmask 261120   ;;  %v608_v25 = vshrl.u32 %v590_v24, %v606_v52 }
 0x1de   : > { %vm1683_vm15 = vcmp.lt.s32.totalorder %v1682_v45, 0  ;;  %v2199_v19 = vmul.u32.u64.low %v790_v50, %v789_v61  ;;  %v2200_v22 = vmul.u32.u64.high %v790_v50, %v789_v61, %v2199_v19  ;;  %v781_v21 = vsel %vm775_vm13, %v778_v62, %v780_v2  ;;  %1739 = vmatprep.mubr.msk.f32.mxu1 %vm1079_vm1, %v1051_v9 }
 0x1df   : > { %v917_v5 = vsel %vm1683_vm15, 0, %v1682_v45  ;;  %vm737_vm3 = vcmp.eq.s32.totalorder %v732_v42, 2  ;;  %v800_v29 = vadd.s32 1, %v2193_v8  ;;  %vm733_vm4 = vcmp.lt.s32.totalorder %v732_v42, 2 }
 0x1e0   : > { %v1812_v59 = vpop.eup %1811  ;;  %v922_v14 = vsub.s32 4294967266, %v917_v5  ;;  %vm730_vm5 = vweird.f32 %v2011_v10  ;;  %v607_v32 = vshll.u32 %v2129_v63, %v2168_v6  ;;  %v613_v33 = vor.u32 4788187, %v612_v13 }
 0x1e1   : > { %v1814_v1 = vpop.eup %1813  ;;  %v735_v18 = vxor.u32 2147483648, %v1812_v59  ;;  %v918_v36 = vsub.s32 32, %v917_v5  ;;  %v797_v37 = vmul.u32 %v790_v50, %v781_v21  ;;  %vm799_vm6 = vc.u32 %v2200_v22, %v2192_v11 }
 0x1e2   : > { %v738_v39 = vxor.u32 2147483648, %v1814_v1  ;;  %v923_v23 = vadd.s32 127, %v922_v14  ;;  %v609_v24 = vor.u32 %v608_v25, %v607_v32  ;;  %v801_v44 = vsel %vm799_vm6, %v800_v29, %v2193_v8 }
 0x1e3   : > { %v736_v26 = vsel %vm734_vm0, %v1814_v1, %v735_v18  ;;  %v902_v42 = vadd.s32 %v2145_v30, %v2150_v35  ;;  %v802_v10 = vadd.s32 %v801_v44, %v797_v37  ;;  %v614_v54 = vand.u32 2147483647, %v613_v33 }
 0x1e4   : > { %v739_v31 = vsel %vm737_vm3, %v738_v39, %v1812_v59  ;;  %v924_v52 = vshll.u32 %v923_v23, 23  ;;  %v616_v6 = vcvt.s32.f32 %v609_v24  ;;  %v919_v38 = vshll.u32 %v2174_v15, %v917_v5 }
 0x1e5   : > { %v740_v40 = vsel %vm733_vm4, %v736_v26, %v739_v31  ;;  %v920_v55 = vshrl.u32 %v902_v42, %v918_v36  ;;  %v803_v63 = vadd.s32 536870912, %v802_v10  ;;  %vm536_vm7 = vcmp.lt.s32.totalorder %v2013_v12, 0 }
 0x1e6   : > { %v2210_v46 = vsel %vm730_vm5, nan, %v740_v40  ;;  %v925_v50 = vor.u32 4788187, %v924_v52  ;;  %v617_v34 = vmul.f32 %v616_v6, %v614_v54  ;;  %vm2221_vm8 = vcmp.le.f32.partialorder %v534_v16, 0.7853982 }
 0x1e7   : > { %v804_v56 = vshrl.u32 %v803_v63, 30  ;;  %v921_v45 = vor.u32 %v920_v55, %v919_v38  ;;  %v620_v61 = vsub.s32 4, %v2122_v48  ;;  %vm848_vm10 = vcmp.lt.s32.totalorder %v2019_v20, 0 }
 0x1e8   : > { %v926_v59 = vand.u32 2147483647, %v925_v50  ;;  %v618_v0 = vxor.u32 2147483648, %v617_v34  ;;  %v798_v16 = vadd.s32 %v2192_v11, %v2200_v22  ;;  %vm2236_vm11 = vcmp.le.f32.partialorder %v846_v41, 0.7853982 }
 0x1e9   : > { %v805_v58 = vshll.u32 %v804_v56, 30  ;;  %v928_v4 = vcvt.s32.f32 %v921_v45  ;;  %v621_v21 = vsel %vm536_vm7, %v620_v61, %v2122_v48  ;;  %v932_v23 = vsub.s32 4, %v2163_v27 }
 0x1ea   : > { %v619_v1 = vsel %vm536_vm7, %v618_v0, %v617_v34  ;;  %v623_v41 = vsel %vm2221_vm8, 0, %v621_v21  ;;  %v828_v37 = vsub.s32 4, %v804_v56  ;;  %vm2256_vm12 = vcmp.le.f32.partialorder %v742_v57, 0.7853982 }
 0x1eb   : > { %v806_v62 = vsub.s32 %v802_v10, %v805_v58  ;;  %v929_v30 = vmul.f32 %v928_v4, %v926_v59  ;;  %v622_v3 = vsel %vm2221_vm8, %v2013_v12, %v619_v1  ;;  %v627_v40 = vadd.s32 3, %v623_v41 }
 0x1ec   : > { %1815 = vcosq.f32 %v622_v3  ;;  %v933_v48 = vsel %vm848_vm10, %v932_v23, %v2163_v27  ;;  %vm744_vm13 = vcmp.lt.s32.totalorder %v2103_v17, 0  ;;  %vm626_vm3 = vweird.f32 %v2013_v12 }
 0x1ed   : > { %v808_v7 = vsub.s32 0, %v806_v62  ;;  %v930_v28 = vxor.u32 2147483648, %v929_v30  ;;  %1817 = vsinq.f32 %v622_v3  ;;  %v935_v44 = vsel %vm2236_vm11, 0, %v933_v48 }
 0x1ee   : > { %v628_v52 = vand.u32 3, %v627_v40  ;;  %v829_v55 = vsel %vm744_vm13, %v828_v37, %v804_v56  ;;  %v939_v6 = vadd.s32 3, %v935_v44  ;;  %v964_v61 = vmul.f32 %v2210_v46, %v2210_v46 }
 0x1ef   : > { %v1677_v35 = vmin.u32 %v808_v7, %v806_v62  ;;  %v931_v9 = vsel %vm848_vm10, %v930_v28, %v929_v30  ;;  %v831_v57 = vsel %vm2256_vm12, 0, %v829_v55  ;;  %vm938_vm7 = vweird.f32 %v2019_v20 }
 0x1f0   : > { %v934_v11 = vsel %vm2236_vm11, %v2019_v20, %v931_v9  ;;  %vm630_vm14 = vcmp.eq.s32.totalorder %v628_v52, 0  ;;  %vm633_vm15 = vcmp.eq.s32.totalorder %v628_v52, 2  ;;  %v940_v59 = vand.u32 3, %v939_v6 }
 0x1f1   : > { %v810_v2 = vclz %v1677_v35  ;;  %1819 = vcosq.f32 %v934_v11  ;;  %v835_v0 = vadd.s32 3, %v831_v57  ;;  %vm629_vm0 = vcmp.lt.s32.totalorder %v628_v52, 2  ;;  %v1007_v57 = vpop.permute.xlu1 %1006 }
 0x1f2   : > { %1821 = vsinq.f32 %v934_v11  ;;  %vm942_vm4 = vcmp.eq.s32.totalorder %v940_v59, 0  ;;  %vm945_vm5 = vcmp.eq.s32.totalorder %v940_v59, 2  ;;  %vm941_vm6 = vcmp.lt.s32.totalorder %v940_v59, 2 }
 0x1f3   : > { %v1678_v5 = vadd.s32 4294967294, %v810_v2  ;;  %v836_v35 = vand.u32 3, %v835_v0  ;;  %vm834_vm11 = vweird.f32 %v2103_v17  ;;  %v968_v20 = vsel %vm348_vm2, %v964_v61, 0.0 }
 0x1f5   : > { %vm1679_vm9 = vcmp.lt.s32.totalorder %v1678_v5, 0  ;;  %vm841_vm8 = vcmp.eq.s32.totalorder %v836_v35, 2  ;;  %vm837_vm10 = vcmp.lt.s32.totalorder %v836_v35, 2 }
 0x1f6   : > { %v813_v8 = vsel %vm1679_vm9, 0, %v1678_v5  ;;  %v1816_v33 = vpop.eup %1815  ;;  %vm838_vm9 = vcmp.eq.s32.totalorder %v836_v35, 0 }
 0x1f7   : > { %v814_v13 = vsub.s32 32, %v813_v8  ;;  %v818_v14 = vsub.s32 4294967266, %v813_v8  ;;  %v815_v19 = vshll.u32 %v806_v62, %v813_v8  ;;  %v1818_v24 = vpop.eup %1817  ;;  %v634_v27 = vxor.u32 2147483648, %v1816_v33 }
 0x1f8   : > { %v631_v63 = vxor.u32 2147483648, %v1818_v24 }
 0x1f9   : > { %v816_v39 = vshrl.u32 %v798_v16, %v814_v13  ;;  %v819_v25 = vadd.s32 127, %v818_v14  ;;  %v635_v58 = vsel %vm633_vm15, %v634_v27, %v1818_v24  ;;  %v951_v16 = vsel %vm348_vm2, %v2210_v46, 0.0 }
 0x1fa   : > { %v632_v45 = vsel %vm630_vm14, %v1816_v33, %v631_v63 }
 0x1fb   : > { %v817_v22 = vor.u32 %v816_v39, %v815_v19  ;;  %v820_v26 = vshll.u32 %v819_v25, 23  ;;  %v1820_v50 = vpop.eup %1819  ;;  %v636_v4 = vsel %vm629_vm0, %v632_v45, %v635_v58 }
 0x1fc   : > { %v1822_v34 = vpop.eup %1821  ;;  %v946_v62 = vxor.u32 2147483648, %v1820_v50  ;;  %v2267_v1 = vsel %vm626_vm3, nan, %v636_v4 }
 0x1fd   : > { %v821_v29 = vor.u32 4788187, %v820_v26  ;;  %v824_v32 = vcvt.s32.f32 %v817_v22  ;;  %v943_v56 = vxor.u32 2147483648, %v1822_v34  ;;  %v963_v5 = vmul.f32 %v2267_v1, %v2267_v1 }
 0x1fe   : > { %v947_v30 = vsel %vm945_vm5, %v946_v62, %v1822_v34  ;;  %v950_v9 = vsel %vm348_vm2, %v2267_v1, 0.0  ;;  %v1002_v34 = vpop.permute.xlu0 %1001 }
 0x1ff   : > { %v822_v31 = vand.u32 2147483647, %v821_v29  ;;  %v944_v7 = vsel %vm942_vm4, %v1820_v50, %v943_v56  ;;  %v967_v19 = vsel %vm348_vm2, %v963_v5, 0.0  ;;  %v952_v25 = vadd.f32 %v951_v16, %v950_v9  ;;  %v1035_v56 = vpop.permute.xlu1 %1034 }
 0x200   : > { %v948_v3 = vsel %vm941_vm6, %v944_v7, %v947_v30  ;;  %v969_v23 = vadd.f32 %v968_v20, %v967_v19 }
 0x201   : > { %v825_v36 = vmul.f32 %v824_v32, %v822_v31  ;;  %v2278_v13 = vsel %vm938_vm7, nan, %v948_v3 }
 0x202   : > { %v966_v21 = vmul.f32 %v2278_v13, %v2278_v13  ;;  %v1030_v59 = vpop.permute.xlu0 %1029 }
 0x203   : > { %v826_v42 = vxor.u32 2147483648, %v825_v36  ;;  %v1017_v0 = vpop.permute.xlu1 %1016 }
 0x204   : > { %v972_v32 = vsel %vm348_vm2, %v966_v21, 0.0 }
 0x205   : > { %v827_v54 = vsel %vm744_vm13, %v826_v42, %v825_v36 }
 0x206   : > { %v830_v38 = vsel %vm2256_vm12, %v2103_v17, %v827_v54  ;;  %v955_v17 = vsel %vm348_vm2, %v2278_v13, 0.0  ;;  %v1012_v62 = vpop.permute.xlu0 %1011 }
 0x207   : > { %1823 = vcosq.f32 %v830_v38 }
 0x208   : > { %1825 = vsinq.f32 %v830_v38 }
 0x20a   : > { %v1040_v16 = vpop.permute.xlu0 %1039 }
 0x211   : > { %v1824_v2 = vpop.eup %1823 }
 0x212   : > { %v1826_v15 = vpop.eup %1825  ;;  %v842_v28 = vxor.u32 2147483648, %v1824_v2 }
 0x213   : > { %v839_v12 = vxor.u32 2147483648, %v1826_v15 }
 0x214   : > { %v843_v8 = vsel %vm841_vm8, %v842_v28, %v1826_v15 }
 0x215   : > { %v840_v14 = vsel %vm838_vm9, %v1824_v2, %v839_v12 }
 0x216   : > { %v844_v18 = vsel %vm837_vm10, %v840_v14, %v843_v8  ;;  %v1045_v14 = vpop.permute.xlu1 %1044 }
 0x217   : > { %v2283_v39 = vsel %vm834_vm11, nan, %v844_v18 }
 0x218   : > { %v953_v11 = vsel %vm348_vm2, %v2283_v39, 0.0  ;;  %v965_v22 = vmul.f32 %v2283_v39, %v2283_v39 }
 0x219   : > { %v954_v26 = vadd.f32 %v953_v11, %v952_v25 }
 0x21a   : > { %v970_v41 = vsel %vm348_vm2, %v965_v22, 0.0  ;;  %v1052_v22 = vld [vmem:[%s2614_s7 + $0x8] sm:$0xff] }
 0x21b   : > { %v956_v29 = vadd.f32 %v955_v17, %v954_v26  ;;  %v971_v31 = vadd.f32 %v970_v41, %v969_v23  ;;  %v1053_v26 = vld [vmem:[%s2614_s7 + $0x10] sm:$0xff]  ;;  %v1054_v23 = vld [vmem:[%s2614_s7 + $0x18] sm:$0xff]  ;;  %v1067_v17 = vpop.permute.xlu1 %1066 }
 0x21d   : > { %v957_v33 = vrot.slane %v956_v29, 4  ;;  %v973_v40 = vadd.f32 %v972_v32, %v971_v31 }
 0x21f   : > { %v958_v48 = vadd.f32 %v957_v33, %v956_v29  ;;  %v974_v36 = vrot.slane %v973_v40, 4  ;;  %v1062_v29 = vpop.permute.xlu0 %1061 }
 0x221   : > { %v959_v37 = vrot.slane %v958_v48, 2  ;;  %v975_v24 = vadd.f32 %v974_v36, %v973_v40  ;;  %v1077_v36 = vpop.permute.xlu1 %1076 }
 0x223   : > { %v960_v44 = vadd.f32 %v959_v37, %v958_v48  ;;  %v976_v42 = vrot.slane %v975_v24, 2 }
 0x225   : > { %v961_v52 = vrot.slane %v960_v44, 1  ;;  %v977_v10 = vadd.f32 %v976_v42, %v975_v24 }
 0x227   : > { %v962_v54 = vadd.f32 %v961_v52, %v960_v44  ;;  %v978_v55 = vrot.slane %v977_v10, 1 }
 0x229   : > { %v979_v63 = vadd.f32 %v978_v55, %v977_v10  ;;  %v980_v27 = vmul.f32 0.03125, %v962_v54 }
 0x22b   : > { %v981_v6 = vmul.f32 0.03125, %v979_v63  ;;  %v982_v38 = vmul.f32 %v980_v27, %v980_v27  ;;  %v985_v4 = vsub.f32 %v2267_v1, %v980_v27  ;;  %v986_v7 = vsub.f32 %v2210_v46, %v980_v27 }
 0x22c   : > { %v987_v30 = vsub.f32 %v2283_v39, %v980_v27  ;;  %v988_v35 = vsub.f32 %v2278_v13, %v980_v27 }
 0x22d   : > { %v983_v50 = vsub.f32 %v981_v6, %v982_v38 }
 0x22f   : > { %v984_v45 = vmax.f32 %v983_v50, 0.0 }
 0x231   : > { %v989_v58 = vadd.f32 1e-05, %v984_v45 }
 0x233   : > { %1827 = vrsqrt.f32 %v989_v58 }
 0x23d   : > { %v1828_v2 = vpop.eup %1827 }
 0x23e   : > { %v991_v15 = vmul.f32 %v1828_v2, %v985_v4  ;;  %v992_v3 = vmul.f32 %v1828_v2, %v986_v7  ;;  %v993_v28 = vmul.f32 %v1828_v2, %v987_v30  ;;  %v994_v5 = vmul.f32 %v1828_v2, %v988_v35 }
 0x240   : > { %v1019_v61 = vmul.f32 %v1002_v34, %v991_v15  ;;  %v1020_v12 = vmul.f32 %v1007_v57, %v992_v3  ;;  %v1021_v8 = vmul.f32 %v1012_v62, %v993_v28  ;;  %v1022_v9 = vmul.f32 %v1017_v0, %v994_v5 }
 0x242   : > { %v1047_v18 = vadd.f32 %v1030_v59, %v1019_v61  ;;  %v1048_v19 = vadd.f32 %v1035_v56, %v1020_v12  ;;  %v1049_v20 = vadd.f32 %v1040_v16, %v1021_v8  ;;  %v1050_v25 = vadd.f32 %v1045_v14, %v1022_v9 }
 0x244   : > { %v1749_v21 = vpack.c.bf16 %v1048_v19, %v1047_v18  ;;  %v1753_v11 = vpack.c.bf16 %v1050_v25, %v1049_v20 }
 0x246   : > { %1750 = vmatprep.subr.bf16.mxu1 %v1749_v21 }
 0x247   : > { %1752 = vmatpush3.bf16.msra.mxu1 %v1749_v21 }
 0x248   : > { %1754 = vmatprep.subr.bf16.mxu1 %v1753_v11 }
 0x24b   : > { %1756 = vmatpush3.bf16.msra.mxu1 %v1753_v11 }
 0x24e   : > { %1740 = vmatmul.mubr.msk.f32.vlgmr.msra.gmra.mrb[0].mxu1 %vm1079_vm1, %v1052_v22 }
 0x24f   : > { %1742 = vmatprep.mubr.msk.f32.mxu1 %vm1079_vm1, %v1053_v26 }
 0x252   : > { %1743 = vmatmul.mubr.msk.f32.gmra.mrb[2].mxu1 %vm1079_vm1, %v1054_v23 }
 0x321   : > { %v1741_v41 = vpop.f32.mrb[0].mxu1 }
 0x322   : > { %v2311_v31 = vadd.f32 %v1741_v41, %v1067_v17  ;;  %v1158_v32 = vpop.f32.mrb[1].mxu1 }
 0x323   : > { %v2313_v33 = vadd.f32 %v1158_v32, %v1062_v29 }
 0x324   : > { %v1281_v40 = vand.u32 2147483647, %v2311_v31  ;;  %v1284_v48 = vand.u32 2139095040, %v2311_v31  ;;  %vm1283_vm10 = vcmp.lt.s32.totalorder %v2311_v31, 0 }
 0x325   : > { %v1177_v37 = vand.u32 2147483647, %v2313_v33  ;;  %v1180_v24 = vand.u32 2139095040, %v2313_v33  ;;  %v1744_v44 = vpop.f32.mrb[2].mxu1 }
 0x326   : > { %v1285_v42 = vshrl.u32 %v1284_v48, 23  ;;  %v1288_v52 = vand.u32 8388607, %v1281_v40  ;;  %v2321_v10 = vadd.f32 %v1744_v44, %v1077_v36  ;;  %v2323_v54 = vpop.f32.mrb[3].mxu1  ;;  %vm2430_vm11 = vcmp.le.f32.partialorder %v1281_v40, 0.7853982 }
 0x327   : > { %v1181_v55 = vshrl.u32 %v1180_v24, 23  ;;  %v1184_v63 = vand.u32 8388607, %v1177_v37 }
 0x328   : > { %v1692_v27 = vadd.s32 4294967169, %v1285_v42  ;;  %v1492_v38 = vand.u32 2139095040, %v2321_v10  ;;  %v1289_v50 = vor.u32 8388608, %v1288_v52  ;;  %v1489_v58 = vand.u32 2147483647, %v2321_v10 }
 0x329   : > { %v1688_v6 = vadd.s32 4294967169, %v1181_v55  ;;  %v1185_v57 = vor.u32 8388608, %v1184_v63 }
 0x32a   : > { %v1291_v34 = vadd.s32 1, %v1692_v27  ;;  %v1493_v59 = vshrl.u32 %v1492_v38, 23  ;;  %v2329_v30 = vshll.u32 %v1289_v50, 8  ;;  %v2337_v15 = vand.u32 8388607, %v1489_v58 }
 0x32b   : > { %v1187_v45 = vadd.s32 1, %v1688_v6  ;;  %v2333_v2 = vshll.u32 %v1185_v57, 8 }
 0x32c   : > { %vm1292_vm1 = vcmp.gt.s32.totalorder %v1291_v34, 0  ;;  %v1700_v62 = vadd.s32 4294967169, %v1493_v59 }
 0x32d   : > { %v1293_v56 = vsel %vm1292_vm1, %v1291_v34, 0  ;;  %vm1188_vm12 = vcmp.gt.s32.totalorder %v1187_v45, 0 }
 0x32e   : > { %v1294_v0 = vshrl.u32 %v1293_v56, 5  ;;  %v1295_v4 = vand.u32 31, %v1293_v56  ;;  %v1189_v7 = vsel %vm1188_vm12, %v1187_v45, 0  ;;  %v2340_v61 = vadd.s32 1, %v1700_v62 }
 0x32f   : > { %v2331_v35 = vshrl.u32 %v1189_v7, 5  ;;  %v1191_v5 = vand.u32 31, %v1189_v7 }
 0x330   : > { %v1296_v3 = vsub.s32 32, %v1295_v4  ;;  %v1298_v28 = vshll.u32 %v1857_v43, %v1295_v4  ;;  %v1301_v12 = vshll.u32 %v1858_v47, %v1295_v4  ;;  %v1304_v8 = vshll.u32 %v1859_v49, %v1295_v4 }
 0x331   : > { %v1307_v9 = vshll.u32 %v1860_v51, %v1295_v4  ;;  %v1310_v16 = vshll.u32 %v1861_v53, %v1295_v4  ;;  %vm1313_vm13 = vcmp.lt.s32.totalorder %v1294_v0, 1  ;;  %vm1314_vm14 = vcmp.lt.s32.totalorder %v1294_v0, 2 }
 0x332   : > { %v1299_v14 = vshrl.u32 %v1858_v47, %v1296_v3  ;;  %v1302_v18 = vshrl.u32 %v1859_v49, %v1296_v3  ;;  %v1305_v19 = vshrl.u32 %v1860_v51, %v1296_v3  ;;  %v1297_v20 = vshrl.u32 %v1857_v43, %v1296_v3 }
 0x333   : > { %v1308_v25 = vshrl.u32 %v1861_v53, %v1296_v3  ;;  %v1311_v21 = vshrl.u32 %v1862_v60, %v1296_v3  ;;  %v1192_v23 = vsub.s32 32, %v1191_v5  ;;  %vm1315_vm15 = vcmp.lt.s32.totalorder %v1294_v0, 3 }
 0x334   : > { %v1300_v11 = vor.u32 %v1299_v14, %v1298_v28  ;;  %v1303_v22 = vor.u32 %v1302_v18, %v1301_v12  ;;  %v1306_v26 = vor.u32 %v1305_v19, %v1304_v8  ;;  %vm1316_vm0 = vcmp.lt.s32.totalorder %v1294_v0, 4 }
 0x335   : > { %v1309_v17 = vor.u32 %v1308_v25, %v1307_v9  ;;  %v1312_v41 = vor.u32 %v1311_v21, %v1310_v16  ;;  %v1194_v52 = vshll.u32 %v1857_v43, %v1191_v5  ;;  %v1195_v27 = vshrl.u32 %v1858_v47, %v1192_v23 }
 0x336   : > { %v1317_v29 = vsel %vm1313_vm13, %v1297_v20, %v1300_v11  ;;  %v1318_v32 = vsel %vm1316_vm0, %v1306_v26, 2102212464  ;;  %v1321_v48 = vsel %vm1313_vm13, %v1300_v11, %v1303_v22  ;;  %v1325_v36 = vsel %vm1313_vm13, %v1303_v22, %v1306_v26 }
 0x337   : > { %v1319_v24 = vsel %vm1315_vm15, %v1303_v22, %v1318_v32  ;;  %v1322_v44 = vsel %vm1316_vm0, %v1309_v17, 920167782  ;;  %v1326_v42 = vsel %vm1316_vm0, %v1312_v41, 1326507024  ;;  %v1197_v6 = vshll.u32 %v1858_v47, %v1191_v5 }
 0x338   : > { %v1323_v55 = vsel %vm1315_vm15, %v1306_v26, %v1322_v44  ;;  %v1327_v63 = vsel %vm1315_vm15, %v1309_v17, %v1326_v42  ;;  %v1320_v38 = vsel %vm1314_vm14, %v1317_v29, %v1319_v24  ;;  %v1198_v57 = vshrl.u32 %v1859_v49, %v1192_v23 }
 0x339   : > { %v1324_v50 = vsel %vm1314_vm14, %v1321_v48, %v1323_v55  ;;  %v1328_v34 = vsel %vm1314_vm14, %v1325_v36, %v1327_v63  ;;  %v1196_v4 = vor.u32 %v1195_v27, %v1194_v52  ;;  %v1200_v3 = vshll.u32 %v1859_v49, %v1191_v5  ;;  %v1072_v36 = vpop.permute.xlu0 %1071 }
 0x33a   : > { %v2363_v45 = vmul.u32.u64.low %v2329_v30, %v1328_v34  ;;  %v2364_v59 = vmul.u32.u64.high %v2329_v30, %v1328_v34, %v2363_v45  ;;  %v2367_v56 = vmul.u32.u64.low %v2329_v30, %v1324_v50  ;;  %v2368_v62 = vmul.u32.u64.high %v2329_v30, %v1324_v50, %v2367_v56 }
 0x33b   : > { %v1199_v7 = vor.u32 %v1198_v57, %v1197_v6  ;;  %v1201_v28 = vshrl.u32 %v1860_v51, %v1192_v23  ;;  %v1193_v0 = vshrl.u32 %v1857_v43, %v1192_v23  ;;  %v1203_v12 = vshll.u32 %v1860_v51, %v1191_v5 }
 0x33c   : > { %v1204_v8 = vshrl.u32 %v1861_v53, %v1192_v23  ;;  %v1207_v9 = vshrl.u32 %v1862_v60, %v1192_v23  ;;  %v1336_v16 = vmul.u32 %v2329_v30, %v1320_v38  ;;  %v1206_v18 = vshll.u32 %v1861_v53, %v1191_v5 }
 0x33d   : > { %v1202_v14 = vor.u32 %v1201_v28, %v1200_v3  ;;  %vm1209_vm3 = vcmp.lt.s32.totalorder %v2331_v35, 1  ;;  %vm1338_vm4 = vc.u32 %v2364_v59, %v2367_v56  ;;  %v1339_v19 = vadd.s32 1, %v2368_v62 }
 0x33e   : > { %v1205_v20 = vor.u32 %v1204_v8, %v1203_v12  ;;  %vm1210_vm5 = vcmp.lt.s32.totalorder %v2331_v35, 2  ;;  %v1208_v25 = vor.u32 %v1207_v9, %v1206_v18  ;;  %vm1211_vm6 = vcmp.lt.s32.totalorder %v2331_v35, 3 }
 0x33f   : > { %vm1212_vm7 = vcmp.lt.s32.totalorder %v2331_v35, 4  ;;  %v1217_v21 = vsel %vm1209_vm3, %v1196_v4, %v1199_v7  ;;  %v1340_v30 = vsel %vm1338_vm4, %v1339_v19, %v2368_v62  ;;  %v1221_v22 = vsel %vm1209_vm3, %v1199_v7, %v1202_v14 }
 0x340   : > { %v1214_v11 = vsel %vm1212_vm7, %v1202_v14, 2102212464  ;;  %v1218_v5 = vsel %vm1212_vm7, %v1205_v20, 920167782  ;;  %v1341_v26 = vadd.s32 %v1340_v30, %v1336_v16  ;;  %v1213_v23 = vsel %vm1209_vm3, %v1193_v0, %v1196_v4 }
 0x341   : > { %v1219_v17 = vsel %vm1211_vm6, %v1202_v14, %v1218_v5  ;;  %v1222_v41 = vsel %vm1212_vm7, %v1208_v25, 1326507024  ;;  %v1215_v29 = vsel %vm1211_vm6, %v1199_v7, %v1214_v11  ;;  %vm1500_vm8 = vcmp.gt.s32.totalorder %v2340_v61, 0 }
 0x342   : > { %v1220_v32 = vsel %vm1210_vm5, %v1217_v21, %v1219_v17  ;;  %v1223_v48 = vsel %vm1211_vm6, %v1205_v20, %v1222_v41  ;;  %v1342_v24 = vadd.s32 536870912, %v1341_v26  ;;  %v1501_v27 = vsel %vm1500_vm8, %v2340_v61, 0 }
 0x343   : > { %v1224_v44 = vsel %vm1210_vm5, %v1221_v22, %v1223_v48  ;;  %v2393_v42 = vmul.u32.u64.low %v2333_v2, %v1220_v32  ;;  %v2394_v52 = vmul.u32.u64.high %v2333_v2, %v1220_v32, %v2393_v42  ;;  %v2403_v6 = vadd.f32 %v2323_v54, %v1072_v36 }
 0x344   : > { %v2398_v55 = vmul.u32.u64.low %v2333_v2, %v1224_v44  ;;  %v2399_v63 = vmul.u32.u64.high %v2333_v2, %v1224_v44, %v2398_v55  ;;  %v1343_v38 = vshrl.u32 %v1342_v24, 30  ;;  %v1216_v50 = vsel %vm1210_vm5, %v1213_v23, %v1215_v29 }
 0x345   : > { %v1503_v34 = vand.u32 31, %v1501_v27  ;;  %v1235_v45 = vadd.s32 1, %v2394_v52  ;;  %v1497_v62 = vor.u32 8388608, %v2337_v15  ;;  %v1232_v4 = vmul.u32 %v2333_v2, %v1216_v50 }
 0x346   : > { %v1344_v57 = vshll.u32 %v1343_v38, 30  ;;  %vm1234_vm9 = vc.u32 %v2399_v63, %v2393_v42  ;;  %v1388_v61 = vand.u32 2139095040, %v2403_v6  ;;  %v1502_v16 = vshrl.u32 %v1501_v27, 5 }
 0x347   : > { %v1504_v7 = vsub.s32 32, %v1503_v34  ;;  %v1236_v3 = vsel %vm1234_vm9, %v1235_v45, %v2394_v52  ;;  %v2415_v0 = vshll.u32 %v1497_v62, 8  ;;  %v1367_v19 = vsub.s32 4, %v1343_v38 }
 0x348   : > { %v1345_v54 = vsub.s32 %v1341_v26, %v1344_v57  ;;  %v1237_v28 = vadd.s32 %v1236_v3, %v1232_v4  ;;  %v1389_v8 = vshrl.u32 %v1388_v61, 23  ;;  %v1506_v25 = vshll.u32 %v1857_v43, %v1503_v34 }
 0x349   : > { %v1507_v15 = vshrl.u32 %v1858_v47, %v1504_v7  ;;  %v1510_v2 = vshrl.u32 %v1859_v49, %v1504_v7  ;;  %v1513_v14 = vshrl.u32 %v1860_v51, %v1504_v7  ;;  %v1516_v18 = vshrl.u32 %v1861_v53, %v1504_v7 }
 0x34a   : > { %v1347_v35 = vsub.s32 0, %v1345_v54  ;;  %v1238_v12 = vadd.s32 536870912, %v1237_v28  ;;  %v1509_v21 = vshll.u32 %v1858_v47, %v1503_v34  ;;  %v1512_v11 = vshll.u32 %v1859_v49, %v1503_v34 }
 0x34b   : > { %v1515_v5 = vshll.u32 %v1860_v51, %v1503_v34  ;;  %v1519_v22 = vshrl.u32 %v1862_v60, %v1504_v7  ;;  %v1337_v23 = vadd.s32 %v2367_v56, %v2364_v59  ;;  %v1508_v41 = vor.u32 %v1507_v15, %v1506_v25 }
 0x34c   : > { %v1693_v9 = vmin.u32 %v1347_v35, %v1345_v54  ;;  %v2421_v20 = vshrl.u32 %v1238_v12, 30  ;;  %v1511_v29 = vor.u32 %v1510_v2, %v1509_v21  ;;  %v1514_v48 = vor.u32 %v1513_v14, %v1512_v11 }
 0x34d   : > { %v1517_v36 = vor.u32 %v1516_v18, %v1515_v5  ;;  %v1518_v24 = vshll.u32 %v1861_v53, %v1503_v34  ;;  %v1368_v44 = vsel %vm1283_vm10, %v1367_v19, %v1343_v38  ;;  %v1505_v40 = vshrl.u32 %v1857_v43, %v1504_v7 }
 0x34e   : > { %v1349_v30 = vclz %v1693_v9  ;;  %v1240_v17 = vshll.u32 %v2421_v20, 30  ;;  %vm1521_vm1 = vcmp.lt.s32.totalorder %v1502_v16, 1  ;;  %vm1522_vm13 = vcmp.lt.s32.totalorder %v1502_v16, 2 }
 0x34f   : > { %v1520_v55 = vor.u32 %v1519_v22, %v1518_v24  ;;  %vm1523_vm14 = vcmp.lt.s32.totalorder %v1502_v16, 3  ;;  %vm1524_vm15 = vcmp.lt.s32.totalorder %v1502_v16, 4  ;;  %v1529_v27 = vsel %vm1521_vm1, %v1508_v41, %v1511_v29 }
 0x350   : > { %v1694_v32 = vadd.s32 4294967294, %v1349_v30  ;;  %v2440_v52 = vsub.s32 %v1237_v28, %v1240_v17  ;;  %v1526_v57 = vsel %vm1524_vm15, %v1514_v48, 2102212464  ;;  %v1530_v45 = vsel %vm1524_vm15, %v1517_v36, 920167782 }
 0x351   : > { %v1531_v4 = vsel %vm1523_vm14, %v1514_v48, %v1530_v45  ;;  %v1533_v7 = vsel %vm1521_vm1, %v1511_v29, %v1514_v48  ;;  %v1534_v35 = vsel %vm1524_vm15, %v1520_v55, 1326507024  ;;  %vm1179_vm0 = vcmp.lt.s32.totalorder %v2313_v33, 0 }
 0x352   : > { %vm1695_vm12 = vcmp.lt.s32.totalorder %v1694_v32, 0  ;;  %v1243_v56 = vsub.s32 0, %v2440_v52  ;;  %v1532_v28 = vsel %vm1522_vm13, %v1529_v27, %v1531_v4  ;;  %v1525_v15 = vsel %vm1521_vm1, %v1505_v40, %v1508_v41 }
 0x353   : > { %v1352_v59 = vsel %vm1695_vm12, 0, %v1694_v32  ;;  %v1527_v2 = vsel %vm1523_vm14, %v1511_v29, %v1526_v57  ;;  %v1696_v9 = vadd.s32 4294967169, %v1389_v8  ;;  %v1370_v18 = vsel %vm2430_vm11, 0, %v1368_v44 }
 0x354   : > { %v1353_v50 = vsub.s32 32, %v1352_v59  ;;  %v1357_v34 = vsub.s32 4294967266, %v1352_v59  ;;  %v1354_v38 = vshll.u32 %v1345_v54, %v1352_v59  ;;  %v1689_v62 = vmin.u32 %v1243_v56, %v2440_v52 }
 0x355   : > { %v1535_v19 = vsel %vm1523_vm14, %v1517_v36, %v1534_v35  ;;  %v2457_v30 = vmul.u32.u64.low %v2415_v0, %v1532_v28  ;;  %v2458_v11 = vmul.u32.u64.high %v2415_v0, %v1532_v28, %v2457_v30  ;;  %v1528_v22 = vsel %vm1522_vm13, %v1525_v15, %v1527_v2 }
 0x356   : > { %v1355_v61 = vshrl.u32 %v1337_v23, %v1353_v50  ;;  %v1358_v3 = vadd.s32 127, %v1357_v34  ;;  %v1245_v12 = vclz %v1689_v62  ;;  %v1536_v21 = vsel %vm1522_vm13, %v1533_v7, %v1535_v19 }
 0x357   : > { %v2463_v8 = vmul.u32.u64.low %v2415_v0, %v1536_v21  ;;  %v2464_v23 = vmul.u32.u64.high %v2415_v0, %v1536_v21, %v2463_v8  ;;  %v1374_v17 = vadd.s32 3, %v1370_v18  ;;  %v1233_v41 = vadd.s32 %v2393_v42, %v2399_v63 }
 0x358   : > { %v1356_v54 = vor.u32 %v1355_v61, %v1354_v38  ;;  %v1359_v14 = vshll.u32 %v1358_v3, 23  ;;  %v1690_v25 = vadd.s32 4294967294, %v1245_v12  ;;  %v1395_v29 = vadd.s32 1, %v1696_v9 }
 0x359   : > { %v1263_v24 = vsub.s32 4, %v2421_v20  ;;  %v1544_v16 = vmul.u32 %v2415_v0, %v1528_v22  ;;  %v1547_v55 = vadd.s32 1, %v2458_v11  ;;  %vm1546_vm4 = vc.u32 %v2464_v23, %v2457_v30 }
 0x35a   : > { %v1360_v5 = vor.u32 4788187, %v1359_v14  ;;  %vm1691_vm3 = vcmp.lt.s32.totalorder %v1690_v25, 0  ;;  %v1363_v48 = vcvt.s32.f32 %v1356_v54  ;;  %vm1396_vm5 = vcmp.gt.s32.totalorder %v1395_v29, 0 }
 0x35b   : > { %v1248_v36 = vsel %vm1691_vm3, 0, %v1690_v25  ;;  %v1548_v27 = vsel %vm1546_vm4, %v1547_v55, %v2458_v11  ;;  %v1397_v50 = vsel %vm1396_vm5, %v1395_v29, 0  ;;  %v1264_v57 = vsel %vm1179_vm0, %v1263_v24, %v2421_v20 }
 0x35c   : > { %v1361_v32 = vand.u32 2147483647, %v1360_v5  ;;  %v1249_v44 = vsub.s32 32, %v1248_v36  ;;  %v1253_v40 = vsub.s32 4294967266, %v1248_v36  ;;  %v1250_v56 = vshll.u32 %v2440_v52, %v1248_v36 }
 0x35d   : > { %v1549_v0 = vadd.s32 %v1548_v27, %v1544_v16  ;;  %v1399_v45 = vand.u32 31, %v1397_v50  ;;  %vm2480_vm6 = vcmp.le.f32.partialorder %v1177_v37, 0.7853982  ;;  %v1385_v61 = vand.u32 2147483647, %v2403_v6 }
 0x35e   : > { %v1364_v59 = vmul.f32 %v1363_v48, %v1361_v32  ;;  %v1251_v42 = vshrl.u32 %v1233_v41, %v1249_v44  ;;  %v1254_v63 = vadd.s32 127, %v1253_v40  ;;  %v1266_v37 = vsel %vm2480_vm6, 0, %v1264_v57 }
 0x35f   : > { %v1550_v7 = vadd.s32 536870912, %v1549_v0  ;;  %v1400_v3 = vsub.s32 32, %v1399_v45  ;;  %v2492_v35 = vand.u32 3, %v1374_v17  ;;  %v1270_v9 = vadd.s32 3, %v1266_v37 }
 0x360   : > { %v1365_v34 = vxor.u32 2147483648, %v1364_v59  ;;  %v1252_v38 = vor.u32 %v1251_v42, %v1250_v56  ;;  %v1255_v62 = vshll.u32 %v1254_v63, 23  ;;  %v1392_v14 = vand.u32 8388607, %v1385_v61 }
 0x361   : > { %v2494_v12 = vshrl.u32 %v1550_v7, 30  ;;  %v1403_v26 = vshrl.u32 %v1858_v47, %v1400_v3  ;;  %v1406_v19 = vshrl.u32 %v1859_v49, %v1400_v3  ;;  %v1411_v25 = vshll.u32 %v1860_v51, %v1399_v45 }
 0x362   : > { %v1366_v4 = vsel %vm1283_vm10, %v1365_v34, %v1364_v59  ;;  %v1256_v28 = vor.u32 4788187, %v1255_v62  ;;  %v1259_v2 = vcvt.s32.f32 %v1252_v38  ;;  %v1412_v21 = vshrl.u32 %v1861_v53, %v1400_v3 }
 0x363   : > { %v1369_v20 = vsel %vm2430_vm11, %v2311_v31, %v1366_v4  ;;  %v1552_v54 = vshll.u32 %v2494_v12, 30  ;;  %vm1380_vm7 = vcmp.eq.s32.totalorder %v2492_v35, 2  ;;  %v2506_v5 = vshrl.u32 %v1397_v50, 5 }
 0x364   : > { %1829 = vcosq.f32 %v1369_v20  ;;  %v1257_v15 = vand.u32 2147483647, %v1256_v28  ;;  %v1402_v22 = vshll.u32 %v1857_v43, %v1399_v45  ;;  %v1409_v8 = vshrl.u32 %v1860_v51, %v1400_v3 }
 0x365   : > { %1831 = vsinq.f32 %v1369_v20  ;;  %v2504_v11 = vsub.s32 %v1549_v0, %v1552_v54  ;;  %vm1377_vm8 = vcmp.eq.s32.totalorder %v2492_v35, 0  ;;  %v1405_v41 = vshll.u32 %v1858_v47, %v1399_v45 }
 0x366   : > { %v1260_v18 = vmul.f32 %v1259_v2, %v1257_v15  ;;  %v1413_v29 = vor.u32 %v1412_v21, %v1411_v25  ;;  %v1415_v32 = vshrl.u32 %v1862_v60, %v1400_v3  ;;  %vm1376_vm9 = vcmp.lt.s32.totalorder %v2492_v35, 2 }
 0x367   : > { %v2514_v48 = vand.u32 3, %v1270_v9  ;;  %v1555_v36 = vsub.s32 0, %v2504_v11  ;;  %v1393_v24 = vor.u32 8388608, %v1392_v14  ;;  %v1408_v44 = vshll.u32 %v1859_v49, %v1399_v45 }
 0x368   : > { %v1261_v17 = vxor.u32 2147483648, %v1260_v18  ;;  %vm1373_vm10 = vweird.f32 %v2311_v31  ;;  %v1404_v40 = vor.u32 %v1403_v26, %v1402_v22  ;;  %v1407_v16 = vor.u32 %v1406_v19, %v1405_v41 }
 0x369   : > { %v1414_v47 = vshll.u32 %v1861_v53, %v1399_v45  ;;  %v1701_v55 = vmin.u32 %v1555_v36, %v2504_v11  ;;  %v1410_v59 = vor.u32 %v1409_v8, %v1408_v44  ;;  %vm1420_vm11 = vcmp.lt.s32.totalorder %v2506_v5, 4 }
 0x36a   : > { %v1262_v51 = vsel %vm1179_vm0, %v1261_v17, %v1260_v18  ;;  %v1545_v49 = vadd.s32 %v2457_v30, %v2464_v23  ;;  %v1426_v42 = vsel %vm1420_vm11, %v1413_v29, 920167782  ;;  %v1401_v27 = vshrl.u32 %v1857_v43, %v1400_v3 }
 0x36b   : > { %v1265_v60 = vsel %vm2480_vm6, %v2313_v33, %v1262_v51  ;;  %v1416_v56 = vor.u32 %v1415_v32, %v1414_v47  ;;  %v1557_v53 = vclz %v1701_v55  ;;  %v1433_v50 = vshll.u32 %v1393_v24, 8 }
 0x36c   : > { %1833 = vcosq.f32 %v1265_v60  ;;  %vm1417_vm1 = vcmp.lt.s32.totalorder %v2506_v5, 1  ;;  %vm1418_vm12 = vcmp.lt.s32.totalorder %v2506_v5, 2  ;;  %vm1419_vm13 = vcmp.lt.s32.totalorder %v2506_v5, 3 }
 0x36d   : > { %1835 = vsinq.f32 %v1265_v60  ;;  %v1702_v23 = vadd.s32 4294967294, %v1557_v53  ;;  %v1425_v0 = vsel %vm1417_vm1, %v1404_v40, %v1407_v16  ;;  %v1427_v45 = vsel %vm1419_vm13, %v1410_v59, %v1426_v42 }
 0x36e   : > { %v1830_v63 = vpop.eup %1829  ;;  %v1422_v43 = vsel %vm1420_vm11, %v1410_v59, 2102212464  ;;  %v1429_v38 = vsel %vm1417_vm1, %v1407_v16, %v1410_v59  ;;  %v1430_v62 = vsel %vm1420_vm11, %v1416_v56, 1326507024  ;;  %v1421_v7 = vsel %vm1417_vm1, %v1401_v27, %v1404_v40 }
 0x36f   : > { %v1832_v34 = vpop.eup %1831  ;;  %v1381_v57 = vxor.u32 2147483648, %v1830_v63  ;;  %vm1703_vm14 = vcmp.lt.s32.totalorder %v1702_v23, 0  ;;  %v1431_v3 = vsel %vm1419_vm13, %v1413_v29, %v1430_v62  ;;  %v1428_v37 = vsel %vm1418_vm12, %v1425_v0, %v1427_v45 }
 0x370   : > { %v1378_v30 = vxor.u32 2147483648, %v1832_v34  ;;  %v1560_v28 = vsel %vm1703_vm14, 0, %v1702_v23  ;;  %v1432_v15 = vsel %vm1418_vm12, %v1429_v38, %v1431_v3  ;;  %v1423_v35 = vsel %vm1419_vm13, %v1407_v16, %v1422_v43 }
 0x371   : > { %v1382_v52 = vsel %vm1380_vm7, %v1381_v57, %v1832_v34  ;;  %v1561_v9 = vsub.s32 32, %v1560_v28  ;;  %v1565_v54 = vsub.s32 4294967266, %v1560_v28  ;;  %v1562_v26 = vshll.u32 %v2504_v11, %v1560_v28 }
 0x372   : > { %v1379_v4 = vsel %vm1377_vm8, %v1830_v63, %v1378_v30  ;;  %v2565_v18 = vmul.u32.u64.low %v1433_v50, %v1432_v15  ;;  %v2566_v19 = vmul.u32.u64.high %v1433_v50, %v1432_v15, %v2565_v18  ;;  %vm1276_vm15 = vcmp.eq.s32.totalorder %v2514_v48, 2 }
 0x373   : > { %v1383_v20 = vsel %vm1376_vm9, %v1379_v4, %v1382_v52  ;;  %v1563_v25 = vshrl.u32 %v1545_v49, %v1561_v9  ;;  %v1566_v21 = vadd.s32 127, %v1565_v54  ;;  %vm1273_vm3 = vcmp.eq.s32.totalorder %v2514_v48, 0 }
 0x374   : > { %v1384_v2 = vsel %vm1373_vm10, nan, %v1383_v20  ;;  %v2568_v22 = vmul.u32.u64.low %v1433_v50, %v1428_v37  ;;  %v2569_v8 = vmul.u32.u64.high %v1433_v50, %v1428_v37, %v2568_v22  ;;  %vm1269_vm4 = vweird.f32 %v2313_v33 }
 0x375   : > { %v1594_v14 = vadd.f32 %v1384_v2, %v2210_v46  ;;  %v1564_v29 = vor.u32 %v1563_v25, %v1562_v26  ;;  %v1567_v32 = vshll.u32 %v1566_v21, 23  ;;  %v1424_v46 = vsel %vm1418_vm12, %v1421_v7, %v1423_v35 }
 0x376   : > { %v1834_v31 = vpop.eup %1833  ;;  %vm1442_vm0 = vc.u32 %v2566_v19, %v2568_v22  ;;  %v1443_v44 = vadd.s32 1, %v2569_v8  ;;  %vm1272_vm5 = vcmp.lt.s32.totalorder %v2514_v48, 2  ;;  %v1440_v40 = vmul.u32 %v1433_v50, %v1424_v46 }
 0x377   : > { %1598 = vst.msk [vmem:[%s2557_s19 + $0x8] sm:$0xff] %vm348_vm2, %v1594_v14  ;;  %v1836_v17 = vpop.eup %1835  ;;  %v1277_v41 = vxor.u32 2147483648, %v1834_v31  ;;  %v1568_v24 = vor.u32 4788187, %v1567_v32  ;;  %v1571_v47 = vcvt.s32.f32 %v1564_v29  ;;  %v1575_v42 = vsub.s32 4, %v2494_v12 }
 0x378   : > { %v1274_v36 = vxor.u32 2147483648, %v1836_v17  ;;  %v1444_v60 = vsel %vm1442_vm0, %v1443_v44, %v2569_v8  ;;  %vm1491_vm6 = vcmp.lt.s32.totalorder %v2321_v10, 0  ;;  %vm1490_vm7 = vcmp.le.f32.partialorder %v1489_v58, 0.7853982 }
 0x379   : > { %v1278_v11 = vsel %vm1276_vm15, %v1277_v41, %v1836_v17  ;;  %v1569_v16 = vand.u32 2147483647, %v1568_v24  ;;  %v1445_v59 = vadd.s32 %v1444_v60, %v1440_v40  ;;  %v1576_v27 = vsel %vm1491_vm6, %v1575_v42, %v2494_v12 }
 0x37a   : > { %v1275_v51 = vsel %vm1273_vm3, %v1834_v31, %v1274_v36  ;;  %v1441_v3 = vadd.s32 %v2568_v22, %v2566_v19  ;;  %vm1581_vm11 = vweird.f32 %v2321_v10  ;;  %vm1387_vm12 = vcmp.lt.s32.totalorder %v2403_v6, 0 }
 0x37b   : > { %v1279_v5 = vsel %vm1272_vm5, %v1275_v51, %v1278_v11  ;;  %v1572_v56 = vmul.f32 %v1571_v47, %v1569_v16  ;;  %v1446_v63 = vadd.s32 536870912, %v1445_v59  ;;  %vm1386_vm13 = vcmp.le.f32.partialorder %v1385_v61, 0.7853982 }
 0x37c   : > { %v1280_v55 = vsel %vm1269_vm4, nan, %v1279_v5  ;;  %vm1477_vm3 = vweird.f32 %v2403_v6 }
 0x37d   : > { %v1593_v49 = vadd.f32 %v1280_v55, %v2267_v1  ;;  %v1573_v33 = vxor.u32 2147483648, %v1572_v56  ;;  %v1447_v48 = vshrl.u32 %v1446_v63, 30  ;;  %v1578_v1 = vsel %vm1490_vm7, 0, %v1576_v27 }
 0x37e   : > { %v1582_v23 = vadd.s32 3, %v1578_v1 }
 0x37f   : > { %1597 = vst.msk [vmem:[%s2557_s19] sm:$0xff] %vm348_vm2, %v1593_v49  ;;  %v1574_v53 = vsel %vm1491_vm6, %v1573_v33, %v1572_v56  ;;  %v1448_v34 = vshll.u32 %v1447_v48, 30  ;;  %v1471_v8 = vsub.s32 4, %v1447_v48 }
 0x380   : > { %v1577_v50 = vsel %vm1490_vm7, %v2321_v10, %v1574_v53  ;;  %v1583_v52 = vand.u32 3, %v1582_v23 }
 0x381   : > { %1837 = vcosq.f32 %v1577_v50  ;;  %v1449_v57 = vsub.s32 %v1445_v59, %v1448_v34  ;;  %v1472_v17 = vsel %vm1387_vm12, %v1471_v8, %v1447_v48 }
 0x382   : > { %1839 = vsinq.f32 %v1577_v50  ;;  %vm1585_vm9 = vcmp.eq.s32.totalorder %v1583_v52, 0  ;;  %vm1588_vm10 = vcmp.eq.s32.totalorder %v1583_v52, 2  ;;  %vm1584_vm1 = vcmp.lt.s32.totalorder %v1583_v52, 2 }
 0x383   : > { %v1451_v30 = vsub.s32 0, %v1449_v57 }
 0x385   : > { %v1697_v0 = vmin.u32 %v1451_v30, %v1449_v57 }
 0x387   : > { %v1453_v45 = vclz %v1697_v0 }
 0x389   : > { %v1698_v43 = vadd.s32 4294967294, %v1453_v45 }
 0x38b   : > { %v1838_v38 = vpop.eup %1837  ;;  %vm1699_vm8 = vcmp.lt.s32.totalorder %v1698_v43, 0 }
 0x38c   : > { %v1840_v62 = vpop.eup %1839  ;;  %v1589_v4 = vxor.u32 2147483648, %v1838_v38  ;;  %v1456_v12 = vsel %vm1699_vm8, 0, %v1698_v43 }
 0x38d   : > { %v1586_v58 = vxor.u32 2147483648, %v1840_v62  ;;  %v1457_v20 = vsub.s32 32, %v1456_v12  ;;  %v1461_v28 = vsub.s32 4294967266, %v1456_v12  ;;  %v1458_v2 = vshll.u32 %v1449_v57, %v1456_v12 }
 0x38e   : > { %v1590_v7 = vsel %vm1588_vm10, %v1589_v4, %v1840_v62 }
 0x38f   : > { %v1587_v37 = vsel %vm1585_vm9, %v1838_v38, %v1586_v58  ;;  %v1459_v9 = vshrl.u32 %v1441_v3, %v1457_v20  ;;  %v1462_v54 = vadd.s32 127, %v1461_v28 }
 0x390   : > { %v1591_v15 = vsel %vm1584_vm1, %v1587_v37, %v1590_v7 }
 0x391   : > { %v1592_v35 = vsel %vm1581_vm11, nan, %v1591_v15  ;;  %v1460_v26 = vor.u32 %v1459_v9, %v1458_v2  ;;  %v1463_v18 = vshll.u32 %v1462_v54, 23 }
 0x392   : > { %v1596_v14 = vadd.f32 %v1592_v35, %v2278_v13  ;;  %v1474_v13 = vsel %vm1386_vm13, 0, %v1472_v17 }
 0x393   : > { %v1464_v25 = vor.u32 4788187, %v1463_v18  ;;  %v1467_v19 = vcvt.s32.f32 %v1460_v26  ;;  %v1478_v29 = vadd.s32 3, %v1474_v13 }
 0x394   : > { %1600 = vst.msk [vmem:[%s2557_s19 + $0x18] sm:$0xff] %vm348_vm2, %v1596_v14 }
 0x395   : > { %v1465_v21 = vand.u32 2147483647, %v1464_v25  ;;  %v1479_v32 = vand.u32 3, %v1478_v29 }
 0x397   : > { %v1468_v22 = vmul.f32 %v1467_v19, %v1465_v21  ;;  %vm1484_vm14 = vcmp.eq.s32.totalorder %v1479_v32, 2  ;;  %vm1481_vm15 = vcmp.eq.s32.totalorder %v1479_v32, 0  ;;  %vm1480_vm0 = vcmp.lt.s32.totalorder %v1479_v32, 2 }
 0x399   : > { %v1469_v31 = vxor.u32 2147483648, %v1468_v22 }
 0x39b   : > { %v1470_v10 = vsel %vm1387_vm12, %v1469_v31, %v1468_v22 }
 0x39c   : > { %v1473_v41 = vsel %vm1386_vm13, %v2403_v6, %v1470_v10 }
 0x39d   : > { %1841 = vcosq.f32 %v1473_v41 }
 0x39e   : > { %1843 = vsinq.f32 %v1473_v41 }
 0x3a7   : > { %v1842_v46 = vpop.eup %1841 }
 0x3a8   : > { %v1844_v36 = vpop.eup %1843  ;;  %v1485_v11 = vxor.u32 2147483648, %v1842_v46 }
 0x3a9   : > { %v1482_v24 = vxor.u32 2147483648, %v1844_v36 }
 0x3aa   : > { %v1486_v44 = vsel %vm1484_vm14, %v1485_v11, %v1844_v36 }
 0x3ab   : > { %v1483_v51 = vsel %vm1481_vm15, %v1842_v46, %v1482_v24 }
 0x3ac   : > { %v1487_v61 = vsel %vm1480_vm0, %v1483_v51, %v1486_v44 }
 0x3ad   : > { %v1488_v40 = vsel %vm1477_vm3, nan, %v1487_v61 }
 0x3ae   : > { %v1595_v5 = vadd.f32 %v1488_v40, %v2283_v39 }
 0x3b0   : > { %1599 = vst.msk [vmem:[%s2557_s19 + $0x10] sm:$0xff] %vm348_vm2, %v1595_v5 }
 0x3b1 PF: > { %s19_s30 = sadd.s32 1, %s1851_s30  }
 0x3b2   : > { %p16_p4 = scmp.ge.s32.totalorder %s19_s30, 4  }
 0x3b4   :  { %18 = sbr.rel (!%p16_p4) target bundleno = 1 (0x1), region = 86 }

</bundles_post_ra>
